<compile_context>
chip_gen: v6e
topology: v6e:2x2x1
jax: 0.10.0
libtpu: 0.0.40
codegen_flags: <defaults>
</compile_context>

<pallas_src>
import functools

import numpy as np
import jax
import jax.numpy as jnp
from jax.experimental import pallas as pl
from jax.experimental.pallas import tpu as pltpu


# --------------------------------------------------------------------------- #
# Host-side structural matrices (static constants baked into the graph).
# They encode reflect padding / stride / pooling / per-sample normalization as
# block-diagonal matrices so every data-movement pattern inside the kernel is
# a plain MXU matmul.
# --------------------------------------------------------------------------- #
def _reflect_index(idx, L):
    if idx < 0:
        return -idx
    if idx >= L:
        return 2 * L - 2 - idx
    return idx


def _gather_matrix(nb, L, k, stride):
    """(k, nb*L_out, nb*L): T[j] @ x = reflect-padded tap j (exact row gather,
    stride folded in).  pad = (k//2, k//2) for odd k, (k//2, k//2-1) for even."""
    pad_l = k // 2
    pad_r = k // 2 if k % 2 else k // 2 - 1
    L_out = (L + pad_l + pad_r - k) // stride + 1
    t = np.zeros((k, nb * L_out, nb * L), np.float32)
    for j in range(k):
        for n in range(nb):
            for p in range(L_out):
                src = _reflect_index(p * stride + j - pad_l, L)
                t[j, n * L_out + p, n * L + src] = 1.0
    return jnp.asarray(t)


def _avg_matrix(nb, L):
    """(nb*L, nb*L): block-diagonal per-sample averaging (InstanceNorm stats)."""
    m = np.zeros((nb * L, nb * L), np.float32)
    for n in range(nb):
        m[n * L:(n + 1) * L, n * L:(n + 1) * L] = 1.0 / L
    return jnp.asarray(m)


def _pool_matrix(nb, L, s):
    """(nb*ceil(L/s), nb*L): F.avg_pool1d(kernel=s, ceil_mode=True), divisor
    clipped at the sequence end (matches PyTorch with no explicit padding)."""
    L_new = -(-L // s)
    m = np.zeros((nb * L_new, nb * L), np.float32)
    for n in range(nb):
        for p in range(L_new):
            lo, hi = p * s, min(p * s + s, L)
            m[n * L_new + p, n * L + lo:n * L + hi] = 1.0 / (hi - lo)
    return jnp.asarray(m)


# --------------------------------------------------------------------------- #
# In-kernel helpers (channel-last packed tiles: rows = NB*L, lanes = C)
# --------------------------------------------------------------------------- #
def _conv_reflect(x, w_wide, b, gat_ref, k, c_out, cdt):
    """Reflect-padded (optionally strided) Conv1d on a packed (R_in, C_in) tile.

    ONE compute-dtype MXU matmul contracts the channels against the tap-major
    weight (C_in, k*C_out); the reflect/stride row gather is then applied as k
    tiny exact 0/1 f32 matmuls on the idle MXU.  f32 accumulation throughout.
    """
    z = jnp.dot(x.astype(cdt), w_wide, preferred_element_type=jnp.float32)
    y = b
    for j in range(k):
        y = y + jnp.dot(gat_ref[j], z[:, j * c_out:(j + 1) * c_out],
                        preferred_element_type=jnp.float32)
    return y


def _inst_norm(y, avg, g, b):
    """InstanceNorm1d (affine, eps=1e-5, biased variance); per-sample mean/var
    via the block-diagonal averaging matmul (packed tile stays 2D)."""
    mean = jnp.dot(avg, y, preferred_element_type=jnp.float32)
    d = y - mean
    var = jnp.dot(avg, d * d, preferred_element_type=jnp.float32)
    return d * jax.lax.rsqrt(var + 1e-5) * g + b


# --------------------------------------------------------------------------- #
# Fused encoder kernel (one grid step = NB batch samples, rows packed)
# --------------------------------------------------------------------------- #
def _encoder_kernel(*refs, treedef, cfg):
    nw = treedef.num_leaves
    x_ref = refs[0]
    P = jax.tree_util.tree_unflatten(treedef, refs[1:1 + nw])
    o_ref = refs[1 + nw]

    c_h = cfg["c_h"]
    ksz = cfg["kernel_size"]
    subsample = cfg["subsample"]
    cdt = cfg["cdt"]

    L_cur = cfg["L"]
    x = x_ref[...].astype(jnp.float32)          # (nb*L, c_in), channel-last

    # ---- conv bank + channel concat + 1x1 in_conv fused algebraically:
    #      out = x @ Wx + b_in + sum_i relu(bank_i(x)) @ Wb_i
    #      (the (nb*c_h + c_in)-channel concat is never materialized)
    out = jnp.dot(x.astype(cdt), P["in_wx"][...],
                  preferred_element_type=jnp.float32) + P["in_b"][...]
    for i, k in enumerate(cfg["bank_ks"]):
        bi = _conv_reflect(x, P["bank_w"][i][...], P["bank_b"][i][...],
                           P["gat"][(L_cur, k, 1)], k, c_h, cdt)
        bi = jnp.maximum(bi, 0.0)               # act applies to bank outputs only
        out = out + jnp.dot(bi.astype(cdt), P["in_wb"][i][...],
                            preferred_element_type=jnp.float32)

    # ---- conv blocks: conv -> relu -> conv(stride) -> relu -> IN -> residual
    for l in range(cfg["n_conv_blocks"]):
        s = subsample[l]
        y = _conv_reflect(out, P["cw1"][l], P["cb1"][l],
                          P["gat"][(L_cur, ksz, 1)], ksz, c_h, cdt)
        y = jnp.maximum(y, 0.0)
        y = _conv_reflect(y, P["cw2"][l], P["cb2"][l],
                          P["gat"][(L_cur, ksz, s)], ksz, c_h, cdt)
        y = jnp.maximum(y, 0.0)
        if s > 1:
            # residual path: ceil-mode avg-pool as a block-diagonal matmul
            out = jnp.dot(P["pool"][l][...], out,
                          preferred_element_type=jnp.float32)
            L_cur = -(-L_cur // s)
        y = _inst_norm(y, P["avg"][L_cur][...], P["cg"][l], P["cbeta"][l])
        out = y + out

    # ---- dense blocks (1x1 convs) with IN + residual
    if cfg["n_dense_blocks"]:
        avg_f = P["avg"][L_cur][...]
        for l in range(cfg["n_dense_blocks"]):
            y = jnp.dot(out.astype(cdt), P["dw1"][l],
                        preferred_element_type=jnp.float32) + P["db1"][l]
            y = jnp.maximum(y, 0.0)
            y = jnp.dot(y.astype(cdt), P["dw2"][l],
                        preferred_element_type=jnp.float32) + P["db2"][l]
            y = jnp.maximum(y, 0.0)
            y = _inst_norm(y, avg_f, P["dg"][l], P["dbeta"][l])
            out = out + y

    # ---- output 1x1 conv, lane-dense store (C padded to a multiple of 128)
    o_ref[...] = (jnp.dot(out.astype(cdt), P["ow"][...],
                          preferred_element_type=jnp.float32)
                  + P["ob"][...]).astype(o_ref.dtype)


# --------------------------------------------------------------------------- #
# Host-side parameter prep / wrapper
# --------------------------------------------------------------------------- #
def _prep_conv_wide(p, cdt):
    # PyTorch Conv1d weight (C_out, C_in, k) -> tap-major (C_in, k*C_out)
    w = jnp.transpose(p["w"], (1, 2, 0))        # (C_in, k, C_out)
    ci, k, co = w.shape
    return (w.reshape(ci, k * co).astype(cdt),
            p["b"].reshape(1, -1).astype(jnp.float32))


def _prep_1x1(p, cdt):
    return (jnp.transpose(p["w"][:, :, 0], (1, 0)).astype(cdt),
            p["b"].reshape(1, -1).astype(jnp.float32))


def _stack_norm(ps):
    return (jnp.stack([p["gamma"].reshape(1, -1).astype(jnp.float32) for p in ps]),
            jnp.stack([p["beta"].reshape(1, -1).astype(jnp.float32) for p in ps]))


def _const_zero_map(ndim):
    def imap(g):
        return (0,) * ndim
    return imap


def encoder_forward(params, x, *, subsample, compute_dtype=jnp.bfloat16,
                    samples_per_step=None):
    """x: (N, c_in, L) NCL like PyTorch.  Returns (N, c_out, L_final) f32."""
    N, c_in, L = x.shape
    c_h = params["in_conv"]["w"].shape[0]
    c_out = params["out_conv"]["w"].shape[0]
    bank_ks = tuple(p["w"].shape[2] for p in params["conv_bank"])
    kernel_size = params["first_conv"][0]["w"].shape[2]
    n_conv_blocks = len(params["first_conv"])
    n_dense_blocks = len(params["first_dense"])
    subsample = tuple(subsample)
    cdt = jnp.dtype(compute_dtype)

    max_k = max(bank_ks + (kernel_size,))
    assert L > max_k // 2, "reflect padding needs L > max_kernel_size // 2"

    # final sequence length
    L_final = L
    for l in range(n_conv_blocks):
        if subsample[l] > 1:
            L_final = -(-L_final // subsample[l])

    # --- batch packing: NB samples share one grid step (rows stacked on the
    #     sublane axis) to raise MXU fill and amortize per-step overhead,
    #     while keeping >= 2 grid steps when the batch allows (v7x megacore).
    if samples_per_step is None:
        nb = max(1, min(N, 256 // max(L, 1)))
        if N >= 2:
            nb = min(nb, (N + 1) // 2)
    else:
        nb = min(N, max(1, int(samples_per_step)))
    if (nb * L) % 8 or (nb * L_final) % 8:       # (8,128) block-shape rule
        nb = N                                    # fall back to one full step
    G = -(-N // nb)
    N_pad = G * nb

    c_out_pad = -(-c_out // 128) * 128            # lane-dense output store

    # --- parameters: tap-major fused conv weights, compute-dtype pre-cast ---
    nbk = len(bank_ks)
    in_w, in_b = _prep_1x1(params["in_conv"], cdt)      # (nbk*c_h + c_in, c_h)
    bank_prep = [_prep_conv_wide(p, cdt) for p in params["conv_bank"]]
    ow, ob = _prep_1x1(params["out_conv"], cdt)
    kp = {
        "bank_w": [w for w, _ in bank_prep],
        "bank_b": [b for _, b in bank_prep],
        "in_wx": in_w[nbk * c_h:, :],
        "in_wb": [in_w[i * c_h:(i + 1) * c_h, :] for i in range(nbk)],
        "in_b": in_b,
        "ow": jnp.pad(ow, ((0, 0), (0, c_out_pad - c_out))),
        "ob": jnp.pad(ob, ((0, 0), (0, c_out_pad - c_out))),
    }
    if n_conv_blocks:
        c1 = [_prep_conv_wide(p, cdt) for p in params["first_conv"]]
        c2 = [_prep_conv_wide(p, cdt) for p in params["second_conv"]]
        kp["cw1"] = jnp.stack([w for w, _ in c1])
        kp["cb1"] = jnp.stack([b for _, b in c1])
        kp["cw2"] = jnp.stack([w for w, _ in c2])
        kp["cb2"] = jnp.stack([b for _, b in c2])
        kp["cg"], kp["cbeta"] = _stack_norm(params["conv_norm"])
    if n_dense_blocks:
        d1 = [_prep_1x1(p, cdt) for p in params["first_dense"]]
        d2 = [_prep_1x1(p, cdt) for p in params["second_dense"]]
        kp["dw1"] = jnp.stack([w for w, _ in d1])
        kp["db1"] = jnp.stack([b for _, b in d1])
        kp["dw2"] = jnp.stack([w for w, _ in d2])
        kp["db2"] = jnp.stack([b for _, b in d2])
        kp["dg"], kp["dbeta"] = _stack_norm(params["dense_norm"])

    # --- static structural matrices (reflect gather / pooling / IN stats) ---
    gat, avg, pool = {}, {}, {}
    L_cur = L
    for k in bank_ks:
        gat.setdefault((L_cur, k, 1), _gather_matrix(nb, L_cur, k, 1))
    for l in range(n_conv_blocks):
        s = subsample[l]
        gat.setdefault((L_cur, kernel_size, 1),
                       _gather_matrix(nb, L_cur, kernel_size, 1))
        gat.setdefault((L_cur, kernel_size, s),
                       _gather_matrix(nb, L_cur, kernel_size, s))
        if s > 1:
            pool[l] = _pool_matrix(nb, L_cur, s)
            L_cur = -(-L_cur // s)
        avg.setdefault(L_cur, _avg_matrix(nb, L_cur))
    avg.setdefault(L_cur, _avg_matrix(nb, L_cur))
    assert L_cur == L_final
    kp["gat"], kp["avg"], kp["pool"] = gat, avg, pool

    flat, treedef = jax.tree_util.tree_flatten(kp)

    cfg = dict(L=L, c_h=c_h, bank_ks=bank_ks, kernel_size=kernel_size,
               n_conv_blocks=n_conv_blocks, n_dense_blocks=n_dense_blocks,
               subsample=subsample, cdt=cdt)

    # one NCL -> NLC transpose at the boundary; NB samples are packed into a
    # contiguous lane-aligned 2D slab per grid step.
    x_nlc = jnp.transpose(x, (0, 2, 1)).astype(jnp.float32)
    if N_pad > N:
        x_nlc = jnp.pad(x_nlc, ((0, N_pad - N), (0, 0), (0, 0)))
    x2d = x_nlc.reshape(N_pad * L, c_in)

    in_specs = [pl.BlockSpec((nb * L, c_in), lambda g: (g, 0))]
    in_specs += [pl.BlockSpec(a.shape, _const_zero_map(a.ndim)) for a in flat]

    out2d = pl.pallas_call(
        functools.partial(_encoder_kernel, treedef=treedef, cfg=cfg),
        out_shape=jax.ShapeDtypeStruct((N_pad * L_final, c_out_pad), jnp.float32),
        grid=(G,),
        in_specs=in_specs,
        out_specs=pl.BlockSpec((nb * L_final, c_out_pad), lambda g: (g, 0)),
        compiler_params=pltpu.CompilerParams(
            dimension_semantics=("parallel",)),
    )(x2d, *flat)

    out = out2d.reshape(N_pad, L_final, c_out_pad)[:N, :, :c_out]
    return jnp.transpose(out, (0, 2, 1))          # back to NCL


# --------------------------------------------------------------------------- #
# Parameter init (PyTorch Conv1d default init)
# --------------------------------------------------------------------------- #
def init_encoder_params(key, c_in, c_h, c_out, kernel_size, bank_size, bank_scale,
                        n_conv_blocks, n_dense_blocks):
    def conv_init(key, c_out_, c_in_, k_):
        kw, kb = jax.random.split(key)
        scale = 1.0 / jnp.sqrt(c_in_ * k_)
        w = jax.random.uniform(kw, (c_out_, c_in_, k_), jnp.float32, -scale, scale)
        b = jax.random.uniform(kb, (c_out_,), jnp.float32, -scale, scale)
        return {"w": w, "b": b}

    keys = jax.random.split(key, 64)
    ki = iter(range(64))
    params = {}

    bank_ks = list(range(bank_scale, bank_size + 1, bank_scale))
    params["conv_bank"] = [conv_init(keys[next(ki)], c_h, c_in, k) for k in bank_ks]

    in_channels = c_h * (bank_size // bank_scale) + c_in
    params["in_conv"] = conv_init(keys[next(ki)], c_h, in_channels, 1)

    params["first_conv"] = [conv_init(keys[next(ki)], c_h, c_h, kernel_size)
                            for _ in range(n_conv_blocks)]
    params["second_conv"] = [conv_init(keys[next(ki)], c_h, c_h, kernel_size)
                             for _ in range(n_conv_blocks)]
    params["conv_norm"] = [{"gamma": jnp.ones((c_h,), jnp.float32),
                            "beta": jnp.zeros((c_h,), jnp.float32)}
                           for _ in range(n_conv_blocks)]

    params["first_dense"] = [conv_init(keys[next(ki)], c_h, c_h, 1)
                             for _ in range(n_dense_blocks)]
    params["second_dense"] = [conv_init(keys[next(ki)], c_h, c_h, 1)
                              for _ in range(n_dense_blocks)]
    params["dense_norm"] = [{"gamma": jnp.ones((c_h,), jnp.float32),
                             "beta": jnp.zeros((c_h,), jnp.float32)}
                            for _ in range(n_dense_blocks)]

    params["out_conv"] = conv_init(keys[next(ki)], c_out, c_h, 1)
    return params


# --------------------------------------------------------------------------- #
# Pure-JAX reference (numerical check; mirrors the PyTorch module)
# --------------------------------------------------------------------------- #
def _ref_conv1d_nlc(x, w, b, stride=1, reflect=True):
    k = w.shape[2]
    if reflect and k > 1:
        pad = (k // 2, k // 2 - 1) if k % 2 == 0 else (k // 2, k // 2)
        x = jnp.pad(x, ((0, 0), pad, (0, 0)), mode="reflect")
    Lp = x.shape[1]
    L_out = (Lp - k) // stride + 1
    y = jnp.zeros((x.shape[0], L_out, w.shape[0]), jnp.float32) + b[None, None, :]
    for j in range(k):
        xs = x[:, j:j + stride * (L_out - 1) + 1:stride, :]
        y = y + jnp.einsum("nlc,oc->nlo", xs, w[:, :, j],
                           precision=jax.lax.Precision.HIGHEST)
    return y


def _ref_inorm_nlc(y, g, bt):
    m = jnp.mean(y, axis=1, keepdims=True)
    v = jnp.mean((y - m) ** 2, axis=1, keepdims=True)
    return (y - m) * jax.lax.rsqrt(v + 1e-5) * g[None, None, :] + bt[None, None, :]


def _ref_avgpool_nlc(y, k):
    N, L, C = y.shape
    L_new = -(-L // k)
    yp = jnp.pad(y, ((0, 0), (0, L_new * k - L), (0, 0)))
    s = yp.reshape(N, L_new, k, C).sum(axis=2)
    counts = jnp.minimum(jnp.arange(L_new) * k + k, L) - jnp.arange(L_new) * k
    return s / counts[None, :, None].astype(y.dtype)


def encoder_reference(params, x, *, subsample):
    relu = lambda t: jnp.maximum(t, 0.0)
    x_nlc = jnp.transpose(x, (0, 2, 1))
    bank = [relu(_ref_conv1d_nlc(x_nlc, p["w"], p["b"])) for p in params["conv_bank"]]
    out = jnp.concatenate(bank + [x_nlc], axis=-1)
    out = _ref_conv1d_nlc(out, params["in_conv"]["w"], params["in_conv"]["b"],
                          reflect=False)
    for l in range(len(params["first_conv"])):
        y = relu(_ref_conv1d_nlc(out, params["first_conv"][l]["w"],
                                 params["first_conv"][l]["b"]))
        y = relu(_ref_conv1d_nlc(y, params["second_conv"][l]["w"],
                                 params["second_conv"][l]["b"], stride=subsample[l]))
        y = _ref_inorm_nlc(y, params["conv_norm"][l]["gamma"],
                           params["conv_norm"][l]["beta"])
        if subsample[l] > 1:
            out = _ref_avgpool_nlc(out, subsample[l])
        out = y + out
    for l in range(len(params["first_dense"])):
        y = relu(_ref_conv1d_nlc(out, params["first_dense"][l]["w"],
                                 params["first_dense"][l]["b"], reflect=False))
        y = relu(_ref_conv1d_nlc(y, params["second_dense"][l]["w"],
                                 params["second_dense"][l]["b"], reflect=False))
        y = _ref_inorm_nlc(y, params["dense_norm"][l]["gamma"],
                           params["dense_norm"][l]["beta"])
        out = out + y
    out = _ref_conv1d_nlc(out, params["out_conv"]["w"], params["out_conv"]["b"],
                          reflect=False)
    return jnp.transpose(out, (0, 2, 1))


# --------------------------------------------------------------------------- #
if __name__ == "__main__":
    # Module hyper-parameters (consistent with Encoder.__init__)
    c_in, c_h, c_out = 4, 32, 4
    kernel_size = 3
    bank_size, bank_scale = 4, 2          # bank kernel sizes: [2, 4]
    n_conv_blocks = 2
    subsample = (1, 2)
    n_dense_blocks = 2
    # act='relu', dropout_rate=0.0 (eval -> identity)

    key = jax.random.PRNGKey(0)
    kparam, kx = jax.random.split(key)
    params = init_encoder_params(kparam, c_in, c_h, c_out, kernel_size,
                                 bank_size, bank_scale, n_conv_blocks,
                                 n_dense_blocks)

    # Input: (batch=2, c_in=4, seq_len=16), NCL layout like PyTorch.
    x = jax.random.normal(kx, (2, c_in, 16), dtype=jnp.float32)

    ref = encoder_reference(params, x, subsample=subsample)

    # 1) strict-precision path (f32 MXU operands): verifies module semantics.
    fwd_f32 = jax.jit(functools.partial(encoder_forward, subsample=subsample,
                                        compute_dtype=jnp.float32))
    out_f32 = fwd_f32(params, x)
    jax.block_until_ready(out_f32)
    assert out_f32.shape == (2, c_out, 8), out_f32.shape
    assert bool(jnp.all(jnp.isfinite(out_f32)))
    err_f32 = float(jnp.max(jnp.abs(out_f32 - ref)))
    assert err_f32 < 2e-3, f"f32 path max abs err vs reference: {err_f32}"

    # 2) fast path (bf16 MXU operands, f32 accumulation) -- the default.
    fwd = jax.jit(functools.partial(encoder_forward, subsample=subsample))
    out = fwd(params, x)
    jax.block_until_ready(out)
    assert out.shape == (2, c_out, 8), out.shape
    assert bool(jnp.all(jnp.isfinite(out)))
    scale = float(jnp.max(jnp.abs(ref)))
    err_bf16 = float(jnp.max(jnp.abs(out - ref)))
    assert err_bf16 < 0.1 + 0.05 * scale, (
        f"bf16 path max abs err vs reference: {err_bf16} (ref scale {scale})")

    print("KERNEL_OK")
</pallas_src>

<mosaic_0001>
module attributes {stable_mosaic.version = 11 : i64} {
  func.func @_encoder_kernel(%arg0: i32, %arg1: memref<16x4xf32, #tpu.memory_space<vmem>>, %arg2: memref<8x8xf32, #tpu.memory_space<vmem>>, %arg3: memref<16x16xf32, #tpu.memory_space<vmem>>, %arg4: memref<1x32xf32, #tpu.memory_space<vmem>>, %arg5: memref<1x32xf32, #tpu.memory_space<vmem>>, %arg6: memref<4x64xf32, #tpu.memory_space<vmem>>, %arg7: memref<4x128xf32, #tpu.memory_space<vmem>>, %arg8: memref<2x1x32xf32, #tpu.memory_space<vmem>>, %arg9: memref<2x1x32xf32, #tpu.memory_space<vmem>>, %arg10: memref<2x1x32xf32, #tpu.memory_space<vmem>>, %arg11: memref<2x1x32xf32, #tpu.memory_space<vmem>>, %arg12: memref<2x32x96xf32, #tpu.memory_space<vmem>>, %arg13: memref<2x32x96xf32, #tpu.memory_space<vmem>>, %arg14: memref<2x1x32xf32, #tpu.memory_space<vmem>>, %arg15: memref<2x1x32xf32, #tpu.memory_space<vmem>>, %arg16: memref<2x1x32xf32, #tpu.memory_space<vmem>>, %arg17: memref<2x1x32xf32, #tpu.memory_space<vmem>>, %arg18: memref<2x32x32xf32, #tpu.memory_space<vmem>>, %arg19: memref<2x32x32xf32, #tpu.memory_space<vmem>>, %arg20: memref<2x16x16xf32, #tpu.memory_space<vmem>>, %arg21: memref<3x16x16xf32, #tpu.memory_space<vmem>>, %arg22: memref<3x8x16xf32, #tpu.memory_space<vmem>>, %arg23: memref<4x16x16xf32, #tpu.memory_space<vmem>>, %arg24: memref<1x32xf32, #tpu.memory_space<vmem>>, %arg25: memref<32x32xf32, #tpu.memory_space<vmem>>, %arg26: memref<32x32xf32, #tpu.memory_space<vmem>>, %arg27: memref<4x32xf32, #tpu.memory_space<vmem>>, %arg28: memref<1x128xf32, #tpu.memory_space<vmem>>, %arg29: memref<32x128xf32, #tpu.memory_space<vmem>>, %arg30: memref<8x16xf32, #tpu.memory_space<vmem>>, %arg31: memref<8x128xf32, #tpu.memory_space<vmem>>) attributes {dimension_semantics = [#tpu.dimension_semantics<parallel>], iteration_bounds = array<i64: 2>, scalar_prefetch = 0 : i64, scratch_operands = 0 : i64, tpu.core_type = #tpu.core_type<tc>, window_params = [{transform_indices = @transform_0, window_bounds = array<i64: 16, 4>}, {pipeline_mode = #tpu.pipeline_mode<synchronous>, transform_indices = @transform_1, window_bounds = array<i64: 8, 8>}, {pipeline_mode = #tpu.pipeline_mode<synchronous>, transform_indices = @transform_2, window_bounds = array<i64: 16, 16>}, {pipeline_mode = #tpu.pipeline_mode<synchronous>, transform_indices = @transform_3, window_bounds = array<i64: 1, 32>}, {pipeline_mode = #tpu.pipeline_mode<synchronous>, transform_indices = @transform_4, window_bounds = array<i64: 1, 32>}, {pipeline_mode = #tpu.pipeline_mode<synchronous>, transform_indices = @transform_5, window_bounds = array<i64: 4, 64>}, {pipeline_mode = #tpu.pipeline_mode<synchronous>, transform_indices = @transform_6, window_bounds = array<i64: 4, 128>}, {pipeline_mode = #tpu.pipeline_mode<synchronous>, transform_indices = @transform_7, window_bounds = array<i64: 2, 1, 32>}, {pipeline_mode = #tpu.pipeline_mode<synchronous>, transform_indices = @transform_8, window_bounds = array<i64: 2, 1, 32>}, {pipeline_mode = #tpu.pipeline_mode<synchronous>, transform_indices = @transform_9, window_bounds = array<i64: 2, 1, 32>}, {pipeline_mode = #tpu.pipeline_mode<synchronous>, transform_indices = @transform_10, window_bounds = array<i64: 2, 1, 32>}, {pipeline_mode = #tpu.pipeline_mode<synchronous>, transform_indices = @transform_11, window_bounds = array<i64: 2, 32, 96>}, {pipeline_mode = #tpu.pipeline_mode<synchronous>, transform_indices = @transform_12, window_bounds = array<i64: 2, 32, 96>}, {pipeline_mode = #tpu.pipeline_mode<synchronous>, transform_indices = @transform_13, window_bounds = array<i64: 2, 1, 32>}, {pipeline_mode = #tpu.pipeline_mode<synchronous>, transform_indices = @transform_14, window_bounds = array<i64: 2, 1, 32>}, {pipeline_mode = #tpu.pipeline_mode<synchronous>, transform_indices = @transform_15, window_bounds = array<i64: 2, 1, 32>}, {pipeline_mode = #tpu.pipeline_mode<synchronous>, transform_indices = @transform_16, window_bounds = array<i64: 2, 1, 32>}, {pipeline_mode = #tpu.pipeline_mode<synchronous>, transform_indices = @transform_17, window_bounds = array<i64: 2, 32, 32>}, {pipeline_mode = #tpu.pipeline_mode<synchronous>, transform_indices = @transform_18, window_bounds = array<i64: 2, 32, 32>}, {pipeline_mode = #tpu.pipeline_mode<synchronous>, transform_indices = @transform_19, window_bounds = array<i64: 2, 16, 16>}, {pipeline_mode = #tpu.pipeline_mode<synchronous>, transform_indices = @transform_20, window_bounds = array<i64: 3, 16, 16>}, {pipeline_mode = #tpu.pipeline_mode<synchronous>, transform_indices = @transform_21, window_bounds = array<i64: 3, 8, 16>}, {pipeline_mode = #tpu.pipeline_mode<synchronous>, transform_indices = @transform_22, window_bounds = array<i64: 4, 16, 16>}, {pipeline_mode = #tpu.pipeline_mode<synchronous>, transform_indices = @transform_23, window_bounds = array<i64: 1, 32>}, {pipeline_mode = #tpu.pipeline_mode<synchronous>, transform_indices = @transform_24, window_bounds = array<i64: 32, 32>}, {pipeline_mode = #tpu.pipeline_mode<synchronous>, transform_indices = @transform_25, window_bounds = array<i64: 32, 32>}, {pipeline_mode = #tpu.pipeline_mode<synchronous>, transform_indices = @transform_26, window_bounds = array<i64: 4, 32>}, {pipeline_mode = #tpu.pipeline_mode<synchronous>, transform_indices = @transform_27, window_bounds = array<i64: 1, 128>}, {pipeline_mode = #tpu.pipeline_mode<synchronous>, transform_indices = @transform_28, window_bounds = array<i64: 32, 128>}, {pipeline_mode = #tpu.pipeline_mode<synchronous>, transform_indices = @transform_29, window_bounds = array<i64: 8, 16>}, {transform_indices = @transform_30, window_bounds = array<i64: 8, 128>}]} {
    %c0 = arith.constant 0 : index
    %c0_0 = arith.constant 0 : index
    %0 = vector.load %arg1[%c0, %c0_0] : memref<16x4xf32, #tpu.memory_space<vmem>>, vector<16x4xf32>
    %c0_1 = arith.constant 0 : index
    %c0_2 = arith.constant 0 : index
    %1 = vector.load %arg27[%c0_1, %c0_2] : memref<4x32xf32, #tpu.memory_space<vmem>>, vector<4x32xf32>
    %cst = arith.constant dense<0.000000e+00> : vector<16x32xf32>
    %2 = tpu.matmul %0, %1, %cst {dimension_numbers = #tpu.dot_dimension_numbers<[1], [0], [0], [1], [0, 0, 1, 1], [], []>} : vector<16x4xf32>, vector<4x32xf32>, vector<16x32xf32> -> vector<16x32xf32>
    %c0_3 = arith.constant 0 : index
    %c0_4 = arith.constant 0 : index
    %3 = vector.load %arg24[%c0_3, %c0_4] : memref<1x32xf32, #tpu.memory_space<vmem>>, vector<1x32xf32>
    %4 = vector.broadcast %3 : vector<1x32xf32> to vector<16x32xf32>
    %5 = arith.addf %2, %4 : vector<16x32xf32>
    %c0_5 = arith.constant 0 : index
    %c0_6 = arith.constant 0 : index
    %6 = vector.load %arg6[%c0_5, %c0_6] : memref<4x64xf32, #tpu.memory_space<vmem>>, vector<4x64xf32>
    %c0_7 = arith.constant 0 : index
    %c0_8 = arith.constant 0 : index
    %7 = vector.load %arg4[%c0_7, %c0_8] : memref<1x32xf32, #tpu.memory_space<vmem>>, vector<1x32xf32>
    %cst_9 = arith.constant dense<0.000000e+00> : vector<16x64xf32>
    %8 = tpu.matmul %0, %6, %cst_9 {dimension_numbers = #tpu.dot_dimension_numbers<[1], [0], [0], [1], [0, 0, 1, 1], [], []>} : vector<16x4xf32>, vector<4x64xf32>, vector<16x64xf32> -> vector<16x64xf32>
    %c0_10 = arith.constant 0 : index
    %c0_11 = arith.constant 0 : index
    %c0_12 = arith.constant 0 : index
    %9 = vector.load %arg20[%c0_10, %c0_11, %c0_12] : memref<2x16x16xf32, #tpu.memory_space<vmem>>, vector<1x16x16xf32>
    %10 = vector.shape_cast %9 : vector<1x16x16xf32> to vector<16x16xf32>
    %11 = vector.extract_strided_slice %8 {offsets = [0, 0], sizes = [16, 32], strides = [1, 1]} : vector<16x64xf32> to vector<16x32xf32>
    %cst_13 = arith.constant dense<0.000000e+00> : vector<16x32xf32>
    %12 = tpu.matmul %10, %11, %cst_13 {dimension_numbers = #tpu.dot_dimension_numbers<[1], [0], [0], [1], [0, 0, 1, 1], [], []>} : vector<16x16xf32>, vector<16x32xf32>, vector<16x32xf32> -> vector<16x32xf32>
    %13 = vector.broadcast %7 : vector<1x32xf32> to vector<16x32xf32>
    %14 = arith.addf %13, %12 : vector<16x32xf32>
    %c1 = arith.constant 1 : index
    %c0_14 = arith.constant 0 : index
    %c0_15 = arith.constant 0 : index
    %15 = vector.load %arg20[%c1, %c0_14, %c0_15] : memref<2x16x16xf32, #tpu.memory_space<vmem>>, vector<1x16x16xf32>
    %16 = vector.shape_cast %15 : vector<1x16x16xf32> to vector<16x16xf32>
    %17 = vector.extract_strided_slice %8 {offsets = [0, 32], sizes = [16, 32], strides = [1, 1]} : vector<16x64xf32> to vector<16x32xf32>
    %cst_16 = arith.constant dense<0.000000e+00> : vector<16x32xf32>
    %18 = tpu.matmul %16, %17, %cst_16 {dimension_numbers = #tpu.dot_dimension_numbers<[1], [0], [0], [1], [0, 0, 1, 1], [], []>} : vector<16x16xf32>, vector<16x32xf32>, vector<16x32xf32> -> vector<16x32xf32>
    %19 = arith.addf %14, %18 : vector<16x32xf32>
    %cst_17 = arith.constant 0.000000e+00 : f32
    %20 = vector.broadcast %cst_17 : f32 to vector<16x32xf32>
    %21 = arith.maximumf %19, %20 : vector<16x32xf32>
    %c0_18 = arith.constant 0 : index
    %c0_19 = arith.constant 0 : index
    %22 = vector.load %arg25[%c0_18, %c0_19] : memref<32x32xf32, #tpu.memory_space<vmem>>, vector<32x32xf32>
    %cst_20 = arith.constant dense<0.000000e+00> : vector<16x32xf32>
    %23 = tpu.matmul %21, %22, %cst_20 {dimension_numbers = #tpu.dot_dimension_numbers<[1], [0], [0], [1], [0, 0, 1, 1], [], []>} : vector<16x32xf32>, vector<32x32xf32>, vector<16x32xf32> -> vector<16x32xf32>
    %24 = arith.addf %5, %23 : vector<16x32xf32>
    %c0_21 = arith.constant 0 : index
    %c0_22 = arith.constant 0 : index
    %25 = vector.load %arg7[%c0_21, %c0_22] : memref<4x128xf32, #tpu.memory_space<vmem>>, vector<4x128xf32>
    %c0_23 = arith.constant 0 : index
    %c0_24 = arith.constant 0 : index
    %26 = vector.load %arg5[%c0_23, %c0_24] : memref<1x32xf32, #tpu.memory_space<vmem>>, vector<1x32xf32>
    %cst_25 = arith.constant dense<0.000000e+00> : vector<16x128xf32>
    %27 = tpu.matmul %0, %25, %cst_25 {dimension_numbers = #tpu.dot_dimension_numbers<[1], [0], [0], [1], [0, 0, 1, 1], [], []>} : vector<16x4xf32>, vector<4x128xf32>, vector<16x128xf32> -> vector<16x128xf32>
    %c0_26 = arith.constant 0 : index
    %c0_27 = arith.constant 0 : index
    %c0_28 = arith.constant 0 : index
    %28 = vector.load %arg23[%c0_26, %c0_27, %c0_28] : memref<4x16x16xf32, #tpu.memory_space<vmem>>, vector<1x16x16xf32>
    %29 = vector.shape_cast %28 : vector<1x16x16xf32> to vector<16x16xf32>
    %30 = vector.extract_strided_slice %27 {offsets = [0, 0], sizes = [16, 32], strides = [1, 1]} : vector<16x128xf32> to vector<16x32xf32>
    %cst_29 = arith.constant dense<0.000000e+00> : vector<16x32xf32>
    %31 = tpu.matmul %29, %30, %cst_29 {dimension_numbers = #tpu.dot_dimension_numbers<[1], [0], [0], [1], [0, 0, 1, 1], [], []>} : vector<16x16xf32>, vector<16x32xf32>, vector<16x32xf32> -> vector<16x32xf32>
    %32 = vector.broadcast %26 : vector<1x32xf32> to vector<16x32xf32>
    %33 = arith.addf %32, %31 : vector<16x32xf32>
    %c1_30 = arith.constant 1 : index
    %c0_31 = arith.constant 0 : index
    %c0_32 = arith.constant 0 : index
    %34 = vector.load %arg23[%c1_30, %c0_31, %c0_32] : memref<4x16x16xf32, #tpu.memory_space<vmem>>, vector<1x16x16xf32>
    %35 = vector.shape_cast %34 : vector<1x16x16xf32> to vector<16x16xf32>
    %36 = vector.extract_strided_slice %27 {offsets = [0, 32], sizes = [16, 32], strides = [1, 1]} : vector<16x128xf32> to vector<16x32xf32>
    %cst_33 = arith.constant dense<0.000000e+00> : vector<16x32xf32>
    %37 = tpu.matmul %35, %36, %cst_33 {dimension_numbers = #tpu.dot_dimension_numbers<[1], [0], [0], [1], [0, 0, 1, 1], [], []>} : vector<16x16xf32>, vector<16x32xf32>, vector<16x32xf32> -> vector<16x32xf32>
    %38 = arith.addf %33, %37 : vector<16x32xf32>
    %c2 = arith.constant 2 : index
    %c0_34 = arith.constant 0 : index
    %c0_35 = arith.constant 0 : index
    %39 = vector.load %arg23[%c2, %c0_34, %c0_35] : memref<4x16x16xf32, #tpu.memory_space<vmem>>, vector<1x16x16xf32>
    %40 = vector.shape_cast %39 : vector<1x16x16xf32> to vector<16x16xf32>
    %41 = vector.extract_strided_slice %27 {offsets = [0, 64], sizes = [16, 32], strides = [1, 1]} : vector<16x128xf32> to vector<16x32xf32>
    %cst_36 = arith.constant dense<0.000000e+00> : vector<16x32xf32>
    %42 = tpu.matmul %40, %41, %cst_36 {dimension_numbers = #tpu.dot_dimension_numbers<[1], [0], [0], [1], [0, 0, 1, 1], [], []>} : vector<16x16xf32>, vector<16x32xf32>, vector<16x32xf32> -> vector<16x32xf32>
    %43 = arith.addf %38, %42 : vector<16x32xf32>
    %c3 = arith.constant 3 : index
    %c0_37 = arith.constant 0 : index
    %c0_38 = arith.constant 0 : index
    %44 = vector.load %arg23[%c3, %c0_37, %c0_38] : memref<4x16x16xf32, #tpu.memory_space<vmem>>, vector<1x16x16xf32>
    %45 = vector.shape_cast %44 : vector<1x16x16xf32> to vector<16x16xf32>
    %46 = vector.extract_strided_slice %27 {offsets = [0, 96], sizes = [16, 32], strides = [1, 1]} : vector<16x128xf32> to vector<16x32xf32>
    %cst_39 = arith.constant dense<0.000000e+00> : vector<16x32xf32>
    %47 = tpu.matmul %45, %46, %cst_39 {dimension_numbers = #tpu.dot_dimension_numbers<[1], [0], [0], [1], [0, 0, 1, 1], [], []>} : vector<16x16xf32>, vector<16x32xf32>, vector<16x32xf32> -> vector<16x32xf32>
    %48 = arith.addf %43, %47 : vector<16x32xf32>
    %cst_40 = arith.constant 0.000000e+00 : f32
    %49 = vector.broadcast %cst_40 : f32 to vector<16x32xf32>
    %50 = arith.maximumf %48, %49 : vector<16x32xf32>
    %c0_41 = arith.constant 0 : index
    %c0_42 = arith.constant 0 : index
    %51 = vector.load %arg26[%c0_41, %c0_42] : memref<32x32xf32, #tpu.memory_space<vmem>>, vector<32x32xf32>
    %cst_43 = arith.constant dense<0.000000e+00> : vector<16x32xf32>
    %52 = tpu.matmul %50, %51, %cst_43 {dimension_numbers = #tpu.dot_dimension_numbers<[1], [0], [0], [1], [0, 0, 1, 1], [], []>} : vector<16x32xf32>, vector<32x32xf32>, vector<16x32xf32> -> vector<16x32xf32>
    %53 = arith.addf %24, %52 : vector<16x32xf32>
    %c0_44 = arith.constant 0 : index
    %c0_45 = arith.constant 0 : index
    %c0_46 = arith.constant 0 : index
    %54 = vector.load %arg12[%c0_44, %c0_45, %c0_46] : memref<2x32x96xf32, #tpu.memory_space<vmem>>, vector<1x32x96xf32>
    %55 = vector.shape_cast %54 : vector<1x32x96xf32> to vector<32x96xf32>
    %c0_47 = arith.constant 0 : index
    %c0_48 = arith.constant 0 : index
    %c0_49 = arith.constant 0 : index
    %56 = vector.load %arg8[%c0_47, %c0_48, %c0_49] : memref<2x1x32xf32, #tpu.memory_space<vmem>>, vector<1x1x32xf32>
    %57 = vector.shape_cast %56 : vector<1x1x32xf32> to vector<1x32xf32>
    %cst_50 = arith.constant dense<0.000000e+00> : vector<16x96xf32>
    %58 = tpu.matmul %53, %55, %cst_50 {dimension_numbers = #tpu.dot_dimension_numbers<[1], [0], [0], [1], [0, 0, 1, 1], [], []>} : vector<16x32xf32>, vector<32x96xf32>, vector<16x96xf32> -> vector<16x96xf32>
    %c0_51 = arith.constant 0 : index
    %c0_52 = arith.constant 0 : index
    %c0_53 = arith.constant 0 : index
    %59 = vector.load %arg21[%c0_51, %c0_52, %c0_53] : memref<3x16x16xf32, #tpu.memory_space<vmem>>, vector<1x16x16xf32>
    %60 = vector.shape_cast %59 : vector<1x16x16xf32> to vector<16x16xf32>
    %61 = vector.extract_strided_slice %58 {offsets = [0, 0], sizes = [16, 32], strides = [1, 1]} : vector<16x96xf32> to vector<16x32xf32>
    %cst_54 = arith.constant dense<0.000000e+00> : vector<16x32xf32>
    %62 = tpu.matmul %60, %61, %cst_54 {dimension_numbers = #tpu.dot_dimension_numbers<[1], [0], [0], [1], [0, 0, 1, 1], [], []>} : vector<16x16xf32>, vector<16x32xf32>, vector<16x32xf32> -> vector<16x32xf32>
    %63 = vector.broadcast %57 : vector<1x32xf32> to vector<16x32xf32>
    %64 = arith.addf %63, %62 : vector<16x32xf32>
    %c1_55 = arith.constant 1 : index
    %c0_56 = arith.constant 0 : index
    %c0_57 = arith.constant 0 : index
    %65 = vector.load %arg21[%c1_55, %c0_56, %c0_57] : memref<3x16x16xf32, #tpu.memory_space<vmem>>, vector<1x16x16xf32>
    %66 = vector.shape_cast %65 : vector<1x16x16xf32> to vector<16x16xf32>
    %67 = vector.extract_strided_slice %58 {offsets = [0, 32], sizes = [16, 32], strides = [1, 1]} : vector<16x96xf32> to vector<16x32xf32>
    %cst_58 = arith.constant dense<0.000000e+00> : vector<16x32xf32>
    %68 = tpu.matmul %66, %67, %cst_58 {dimension_numbers = #tpu.dot_dimension_numbers<[1], [0], [0], [1], [0, 0, 1, 1], [], []>} : vector<16x16xf32>, vector<16x32xf32>, vector<16x32xf32> -> vector<16x32xf32>
    %69 = arith.addf %64, %68 : vector<16x32xf32>
    %c2_59 = arith.constant 2 : index
    %c0_60 = arith.constant 0 : index
    %c0_61 = arith.constant 0 : index
    %70 = vector.load %arg21[%c2_59, %c0_60, %c0_61] : memref<3x16x16xf32, #tpu.memory_space<vmem>>, vector<1x16x16xf32>
    %71 = vector.shape_cast %70 : vector<1x16x16xf32> to vector<16x16xf32>
    %72 = vector.extract_strided_slice %58 {offsets = [0, 64], sizes = [16, 32], strides = [1, 1]} : vector<16x96xf32> to vector<16x32xf32>
    %cst_62 = arith.constant dense<0.000000e+00> : vector<16x32xf32>
    %73 = tpu.matmul %71, %72, %cst_62 {dimension_numbers = #tpu.dot_dimension_numbers<[1], [0], [0], [1], [0, 0, 1, 1], [], []>} : vector<16x16xf32>, vector<16x32xf32>, vector<16x32xf32> -> vector<16x32xf32>
    %74 = arith.addf %69, %73 : vector<16x32xf32>
    %cst_63 = arith.constant 0.000000e+00 : f32
    %75 = vector.broadcast %cst_63 : f32 to vector<16x32xf32>
    %76 = arith.maximumf %74, %75 : vector<16x32xf32>
    %c0_64 = arith.constant 0 : index
    %c0_65 = arith.constant 0 : index
    %c0_66 = arith.constant 0 : index
    %77 = vector.load %arg13[%c0_64, %c0_65, %c0_66] : memref<2x32x96xf32, #tpu.memory_space<vmem>>, vector<1x32x96xf32>
    %78 = vector.shape_cast %77 : vector<1x32x96xf32> to vector<32x96xf32>
    %c0_67 = arith.constant 0 : index
    %c0_68 = arith.constant 0 : index
    %c0_69 = arith.constant 0 : index
    %79 = vector.load %arg9[%c0_67, %c0_68, %c0_69] : memref<2x1x32xf32, #tpu.memory_space<vmem>>, vector<1x1x32xf32>
    %80 = vector.shape_cast %79 : vector<1x1x32xf32> to vector<1x32xf32>
    %cst_70 = arith.constant dense<0.000000e+00> : vector<16x96xf32>
    %81 = tpu.matmul %76, %78, %cst_70 {dimension_numbers = #tpu.dot_dimension_numbers<[1], [0], [0], [1], [0, 0, 1, 1], [], []>} : vector<16x32xf32>, vector<32x96xf32>, vector<16x96xf32> -> vector<16x96xf32>
    %c0_71 = arith.constant 0 : index
    %c0_72 = arith.constant 0 : index
    %c0_73 = arith.constant 0 : index
    %82 = vector.load %arg21[%c0_71, %c0_72, %c0_73] : memref<3x16x16xf32, #tpu.memory_space<vmem>>, vector<1x16x16xf32>
    %83 = vector.shape_cast %82 : vector<1x16x16xf32> to vector<16x16xf32>
    %84 = vector.extract_strided_slice %81 {offsets = [0, 0], sizes = [16, 32], strides = [1, 1]} : vector<16x96xf32> to vector<16x32xf32>
    %cst_74 = arith.constant dense<0.000000e+00> : vector<16x32xf32>
    %85 = tpu.matmul %83, %84, %cst_74 {dimension_numbers = #tpu.dot_dimension_numbers<[1], [0], [0], [1], [0, 0, 1, 1], [], []>} : vector<16x16xf32>, vector<16x32xf32>, vector<16x32xf32> -> vector<16x32xf32>
    %86 = vector.broadcast %80 : vector<1x32xf32> to vector<16x32xf32>
    %87 = arith.addf %86, %85 : vector<16x32xf32>
    %c1_75 = arith.constant 1 : index
    %c0_76 = arith.constant 0 : index
    %c0_77 = arith.constant 0 : index
    %88 = vector.load %arg21[%c1_75, %c0_76, %c0_77] : memref<3x16x16xf32, #tpu.memory_space<vmem>>, vector<1x16x16xf32>
    %89 = vector.shape_cast %88 : vector<1x16x16xf32> to vector<16x16xf32>
    %90 = vector.extract_strided_slice %81 {offsets = [0, 32], sizes = [16, 32], strides = [1, 1]} : vector<16x96xf32> to vector<16x32xf32>
    %cst_78 = arith.constant dense<0.000000e+00> : vector<16x32xf32>
    %91 = tpu.matmul %89, %90, %cst_78 {dimension_numbers = #tpu.dot_dimension_numbers<[1], [0], [0], [1], [0, 0, 1, 1], [], []>} : vector<16x16xf32>, vector<16x32xf32>, vector<16x32xf32> -> vector<16x32xf32>
    %92 = arith.addf %87, %91 : vector<16x32xf32>
    %c2_79 = arith.constant 2 : index
    %c0_80 = arith.constant 0 : index
    %c0_81 = arith.constant 0 : index
    %93 = vector.load %arg21[%c2_79, %c0_80, %c0_81] : memref<3x16x16xf32, #tpu.memory_space<vmem>>, vector<1x16x16xf32>
    %94 = vector.shape_cast %93 : vector<1x16x16xf32> to vector<16x16xf32>
    %95 = vector.extract_strided_slice %81 {offsets = [0, 64], sizes = [16, 32], strides = [1, 1]} : vector<16x96xf32> to vector<16x32xf32>
    %cst_82 = arith.constant dense<0.000000e+00> : vector<16x32xf32>
    %96 = tpu.matmul %94, %95, %cst_82 {dimension_numbers = #tpu.dot_dimension_numbers<[1], [0], [0], [1], [0, 0, 1, 1], [], []>} : vector<16x16xf32>, vector<16x32xf32>, vector<16x32xf32> -> vector<16x32xf32>
    %97 = arith.addf %92, %96 : vector<16x32xf32>
    %cst_83 = arith.constant 0.000000e+00 : f32
    %98 = vector.broadcast %cst_83 : f32 to vector<16x32xf32>
    %99 = arith.maximumf %97, %98 : vector<16x32xf32>
    %c0_84 = arith.constant 0 : index
    %c0_85 = arith.constant 0 : index
    %100 = vector.load %arg3[%c0_84, %c0_85] : memref<16x16xf32, #tpu.memory_space<vmem>>, vector<16x16xf32>
    %c0_86 = arith.constant 0 : index
    %c0_87 = arith.constant 0 : index
    %c0_88 = arith.constant 0 : index
    %101 = vector.load %arg11[%c0_86, %c0_87, %c0_88] : memref<2x1x32xf32, #tpu.memory_space<vmem>>, vector<1x1x32xf32>
    %102 = vector.shape_cast %101 : vector<1x1x32xf32> to vector<1x32xf32>
    %c0_89 = arith.constant 0 : index
    %c0_90 = arith.constant 0 : index
    %c0_91 = arith.constant 0 : index
    %103 = vector.load %arg10[%c0_89, %c0_90, %c0_91] : memref<2x1x32xf32, #tpu.memory_space<vmem>>, vector<1x1x32xf32>
    %104 = vector.shape_cast %103 : vector<1x1x32xf32> to vector<1x32xf32>
    %cst_92 = arith.constant dense<0.000000e+00> : vector<16x32xf32>
    %105 = tpu.matmul %100, %99, %cst_92 {dimension_numbers = #tpu.dot_dimension_numbers<[1], [0], [0], [1], [0, 0, 1, 1], [], []>} : vector<16x16xf32>, vector<16x32xf32>, vector<16x32xf32> -> vector<16x32xf32>
    %106 = arith.subf %99, %105 : vector<16x32xf32>
    %107 = arith.mulf %106, %106 : vector<16x32xf32>
    %cst_93 = arith.constant dense<0.000000e+00> : vector<16x32xf32>
    %108 = tpu.matmul %100, %107, %cst_93 {dimension_numbers = #tpu.dot_dimension_numbers<[1], [0], [0], [1], [0, 0, 1, 1], [], []>} : vector<16x16xf32>, vector<16x32xf32>, vector<16x32xf32> -> vector<16x32xf32>
    %cst_94 = arith.constant 9.99999974E-6 : f32
    %109 = vector.broadcast %cst_94 : f32 to vector<16x32xf32>
    %110 = arith.addf %108, %109 : vector<16x32xf32>
    %111 = math.rsqrt %110 : vector<16x32xf32>
    %112 = arith.mulf %106, %111 : vector<16x32xf32>
    %113 = vector.broadcast %102 : vector<1x32xf32> to vector<16x32xf32>
    %114 = arith.mulf %112, %113 : vector<16x32xf32>
    %115 = vector.broadcast %104 : vector<1x32xf32> to vector<16x32xf32>
    %116 = arith.addf %114, %115 : vector<16x32xf32>
    %117 = arith.addf %116, %53 : vector<16x32xf32>
    %c1_95 = arith.constant 1 : index
    %c0_96 = arith.constant 0 : index
    %c0_97 = arith.constant 0 : index
    %118 = vector.load %arg12[%c1_95, %c0_96, %c0_97] : memref<2x32x96xf32, #tpu.memory_space<vmem>>, vector<1x32x96xf32>
    %119 = vector.shape_cast %118 : vector<1x32x96xf32> to vector<32x96xf32>
    %c1_98 = arith.constant 1 : index
    %c0_99 = arith.constant 0 : index
    %c0_100 = arith.constant 0 : index
    %120 = vector.load %arg8[%c1_98, %c0_99, %c0_100] : memref<2x1x32xf32, #tpu.memory_space<vmem>>, vector<1x1x32xf32>
    %121 = vector.shape_cast %120 : vector<1x1x32xf32> to vector<1x32xf32>
    %cst_101 = arith.constant dense<0.000000e+00> : vector<16x96xf32>
    %122 = tpu.matmul %117, %119, %cst_101 {dimension_numbers = #tpu.dot_dimension_numbers<[1], [0], [0], [1], [0, 0, 1, 1], [], []>} : vector<16x32xf32>, vector<32x96xf32>, vector<16x96xf32> -> vector<16x96xf32>
    %c0_102 = arith.constant 0 : index
    %c0_103 = arith.constant 0 : index
    %c0_104 = arith.constant 0 : index
    %123 = vector.load %arg21[%c0_102, %c0_103, %c0_104] : memref<3x16x16xf32, #tpu.memory_space<vmem>>, vector<1x16x16xf32>
    %124 = vector.shape_cast %123 : vector<1x16x16xf32> to vector<16x16xf32>
    %125 = vector.extract_strided_slice %122 {offsets = [0, 0], sizes = [16, 32], strides = [1, 1]} : vector<16x96xf32> to vector<16x32xf32>
    %cst_105 = arith.constant dense<0.000000e+00> : vector<16x32xf32>
    %126 = tpu.matmul %124, %125, %cst_105 {dimension_numbers = #tpu.dot_dimension_numbers<[1], [0], [0], [1], [0, 0, 1, 1], [], []>} : vector<16x16xf32>, vector<16x32xf32>, vector<16x32xf32> -> vector<16x32xf32>
    %127 = vector.broadcast %121 : vector<1x32xf32> to vector<16x32xf32>
    %128 = arith.addf %127, %126 : vector<16x32xf32>
    %c1_106 = arith.constant 1 : index
    %c0_107 = arith.constant 0 : index
    %c0_108 = arith.constant 0 : index
    %129 = vector.load %arg21[%c1_106, %c0_107, %c0_108] : memref<3x16x16xf32, #tpu.memory_space<vmem>>, vector<1x16x16xf32>
    %130 = vector.shape_cast %129 : vector<1x16x16xf32> to vector<16x16xf32>
    %131 = vector.extract_strided_slice %122 {offsets = [0, 32], sizes = [16, 32], strides = [1, 1]} : vector<16x96xf32> to vector<16x32xf32>
    %cst_109 = arith.constant dense<0.000000e+00> : vector<16x32xf32>
    %132 = tpu.matmul %130, %131, %cst_109 {dimension_numbers = #tpu.dot_dimension_numbers<[1], [0], [0], [1], [0, 0, 1, 1], [], []>} : vector<16x16xf32>, vector<16x32xf32>, vector<16x32xf32> -> vector<16x32xf32>
    %133 = arith.addf %128, %132 : vector<16x32xf32>
    %c2_110 = arith.constant 2 : index
    %c0_111 = arith.constant 0 : index
    %c0_112 = arith.constant 0 : index
    %134 = vector.load %arg21[%c2_110, %c0_111, %c0_112] : memref<3x16x16xf32, #tpu.memory_space<vmem>>, vector<1x16x16xf32>
    %135 = vector.shape_cast %134 : vector<1x16x16xf32> to vector<16x16xf32>
    %136 = vector.extract_strided_slice %122 {offsets = [0, 64], sizes = [16, 32], strides = [1, 1]} : vector<16x96xf32> to vector<16x32xf32>
    %cst_113 = arith.constant dense<0.000000e+00> : vector<16x32xf32>
    %137 = tpu.matmul %135, %136, %cst_113 {dimension_numbers = #tpu.dot_dimension_numbers<[1], [0], [0], [1], [0, 0, 1, 1], [], []>} : vector<16x16xf32>, vector<16x32xf32>, vector<16x32xf32> -> vector<16x32xf32>
    %138 = arith.addf %133, %137 : vector<16x32xf32>
    %cst_114 = arith.constant 0.000000e+00 : f32
    %139 = vector.broadcast %cst_114 : f32 to vector<16x32xf32>
    %140 = arith.maximumf %138, %139 : vector<16x32xf32>
    %c1_115 = arith.constant 1 : index
    %c0_116 = arith.constant 0 : index
    %c0_117 = arith.constant 0 : index
    %141 = vector.load %arg13[%c1_115, %c0_116, %c0_117] : memref<2x32x96xf32, #tpu.memory_space<vmem>>, vector<1x32x96xf32>
    %142 = vector.shape_cast %141 : vector<1x32x96xf32> to vector<32x96xf32>
    %c1_118 = arith.constant 1 : index
    %c0_119 = arith.constant 0 : index
    %c0_120 = arith.constant 0 : index
    %143 = vector.load %arg9[%c1_118, %c0_119, %c0_120] : memref<2x1x32xf32, #tpu.memory_space<vmem>>, vector<1x1x32xf32>
    %144 = vector.shape_cast %143 : vector<1x1x32xf32> to vector<1x32xf32>
    %cst_121 = arith.constant dense<0.000000e+00> : vector<16x96xf32>
    %145 = tpu.matmul %140, %142, %cst_121 {dimension_numbers = #tpu.dot_dimension_numbers<[1], [0], [0], [1], [0, 0, 1, 1], [], []>} : vector<16x32xf32>, vector<32x96xf32>, vector<16x96xf32> -> vector<16x96xf32>
    %c0_122 = arith.constant 0 : index
    %c0_123 = arith.constant 0 : index
    %c0_124 = arith.constant 0 : index
    %146 = vector.load %arg22[%c0_122, %c0_123, %c0_124] : memref<3x8x16xf32, #tpu.memory_space<vmem>>, vector<1x8x16xf32>
    %147 = vector.shape_cast %146 : vector<1x8x16xf32> to vector<8x16xf32>
    %148 = vector.extract_strided_slice %145 {offsets = [0, 0], sizes = [16, 32], strides = [1, 1]} : vector<16x96xf32> to vector<16x32xf32>
    %cst_125 = arith.constant dense<0.000000e+00> : vector<8x32xf32>
    %149 = tpu.matmul %147, %148, %cst_125 {dimension_numbers = #tpu.dot_dimension_numbers<[1], [0], [0], [1], [0, 0, 1, 1], [], []>} : vector<8x16xf32>, vector<16x32xf32>, vector<8x32xf32> -> vector<8x32xf32>
    %150 = vector.broadcast %144 : vector<1x32xf32> to vector<8x32xf32>
    %151 = arith.addf %150, %149 : vector<8x32xf32>
    %c1_126 = arith.constant 1 : index
    %c0_127 = arith.constant 0 : index
    %c0_128 = arith.constant 0 : index
    %152 = vector.load %arg22[%c1_126, %c0_127, %c0_128] : memref<3x8x16xf32, #tpu.memory_space<vmem>>, vector<1x8x16xf32>
    %153 = vector.shape_cast %152 : vector<1x8x16xf32> to vector<8x16xf32>
    %154 = vector.extract_strided_slice %145 {offsets = [0, 32], sizes = [16, 32], strides = [1, 1]} : vector<16x96xf32> to vector<16x32xf32>
    %cst_129 = arith.constant dense<0.000000e+00> : vector<8x32xf32>
    %155 = tpu.matmul %153, %154, %cst_129 {dimension_numbers = #tpu.dot_dimension_numbers<[1], [0], [0], [1], [0, 0, 1, 1], [], []>} : vector<8x16xf32>, vector<16x32xf32>, vector<8x32xf32> -> vector<8x32xf32>
    %156 = arith.addf %151, %155 : vector<8x32xf32>
    %c2_130 = arith.constant 2 : index
    %c0_131 = arith.constant 0 : index
    %c0_132 = arith.constant 0 : index
    %157 = vector.load %arg22[%c2_130, %c0_131, %c0_132] : memref<3x8x16xf32, #tpu.memory_space<vmem>>, vector<1x8x16xf32>
    %158 = vector.shape_cast %157 : vector<1x8x16xf32> to vector<8x16xf32>
    %159 = vector.extract_strided_slice %145 {offsets = [0, 64], sizes = [16, 32], strides = [1, 1]} : vector<16x96xf32> to vector<16x32xf32>
    %cst_133 = arith.constant dense<0.000000e+00> : vector<8x32xf32>
    %160 = tpu.matmul %158, %159, %cst_133 {dimension_numbers = #tpu.dot_dimension_numbers<[1], [0], [0], [1], [0, 0, 1, 1], [], []>} : vector<8x16xf32>, vector<16x32xf32>, vector<8x32xf32> -> vector<8x32xf32>
    %161 = arith.addf %156, %160 : vector<8x32xf32>
    %cst_134 = arith.constant 0.000000e+00 : f32
    %162 = vector.broadcast %cst_134 : f32 to vector<8x32xf32>
    %163 = arith.maximumf %161, %162 : vector<8x32xf32>
    %c0_135 = arith.constant 0 : index
    %c0_136 = arith.constant 0 : index
    %164 = vector.load %arg30[%c0_135, %c0_136] : memref<8x16xf32, #tpu.memory_space<vmem>>, vector<8x16xf32>
    %cst_137 = arith.constant dense<0.000000e+00> : vector<8x32xf32>
    %165 = tpu.matmul %164, %117, %cst_137 {dimension_numbers = #tpu.dot_dimension_numbers<[1], [0], [0], [1], [0, 0, 1, 1], [], []>} : vector<8x16xf32>, vector<16x32xf32>, vector<8x32xf32> -> vector<8x32xf32>
    %c0_138 = arith.constant 0 : index
    %c0_139 = arith.constant 0 : index
    %166 = vector.load %arg2[%c0_138, %c0_139] : memref<8x8xf32, #tpu.memory_space<vmem>>, vector<8x8xf32>
    %c1_140 = arith.constant 1 : index
    %c0_141 = arith.constant 0 : index
    %c0_142 = arith.constant 0 : index
    %167 = vector.load %arg11[%c1_140, %c0_141, %c0_142] : memref<2x1x32xf32, #tpu.memory_space<vmem>>, vector<1x1x32xf32>
    %168 = vector.shape_cast %167 : vector<1x1x32xf32> to vector<1x32xf32>
    %c1_143 = arith.constant 1 : index
    %c0_144 = arith.constant 0 : index
    %c0_145 = arith.constant 0 : index
    %169 = vector.load %arg10[%c1_143, %c0_144, %c0_145] : memref<2x1x32xf32, #tpu.memory_space<vmem>>, vector<1x1x32xf32>
    %170 = vector.shape_cast %169 : vector<1x1x32xf32> to vector<1x32xf32>
    %cst_146 = arith.constant dense<0.000000e+00> : vector<8x32xf32>
    %171 = tpu.matmul %166, %163, %cst_146 {dimension_numbers = #tpu.dot_dimension_numbers<[1], [0], [0], [1], [0, 0, 1, 1], [], []>} : vector<8x8xf32>, vector<8x32xf32>, vector<8x32xf32> -> vector<8x32xf32>
    %172 = arith.subf %163, %171 : vector<8x32xf32>
    %173 = arith.mulf %172, %172 : vector<8x32xf32>
    %cst_147 = arith.constant dense<0.000000e+00> : vector<8x32xf32>
    %174 = tpu.matmul %166, %173, %cst_147 {dimension_numbers = #tpu.dot_dimension_numbers<[1], [0], [0], [1], [0, 0, 1, 1], [], []>} : vector<8x8xf32>, vector<8x32xf32>, vector<8x32xf32> -> vector<8x32xf32>
    %cst_148 = arith.constant 9.99999974E-6 : f32
    %175 = vector.broadcast %cst_148 : f32 to vector<8x32xf32>
    %176 = arith.addf %174, %175 : vector<8x32xf32>
    %177 = math.rsqrt %176 : vector<8x32xf32>
    %178 = arith.mulf %172, %177 : vector<8x32xf32>
    %179 = vector.broadcast %168 : vector<1x32xf32> to vector<8x32xf32>
    %180 = arith.mulf %178, %179 : vector<8x32xf32>
    %181 = vector.broadcast %170 : vector<1x32xf32> to vector<8x32xf32>
    %182 = arith.addf %180, %181 : vector<8x32xf32>
    %183 = arith.addf %182, %165 : vector<8x32xf32>
    %c0_149 = arith.constant 0 : index
    %c0_150 = arith.constant 0 : index
    %184 = vector.load %arg2[%c0_149, %c0_150] : memref<8x8xf32, #tpu.memory_space<vmem>>, vector<8x8xf32>
    %c0_151 = arith.constant 0 : index
    %c0_152 = arith.constant 0 : index
    %c0_153 = arith.constant 0 : index
    %185 = vector.load %arg18[%c0_151, %c0_152, %c0_153] : memref<2x32x32xf32, #tpu.memory_space<vmem>>, vector<1x32x32xf32>
    %186 = vector.shape_cast %185 : vector<1x32x32xf32> to vector<32x32xf32>
    %cst_154 = arith.constant dense<0.000000e+00> : vector<8x32xf32>
    %187 = tpu.matmul %183, %186, %cst_154 {dimension_numbers = #tpu.dot_dimension_numbers<[1], [0], [0], [1], [0, 0, 1, 1], [], []>} : vector<8x32xf32>, vector<32x32xf32>, vector<8x32xf32> -> vector<8x32xf32>
    %c0_155 = arith.constant 0 : index
    %c0_156 = arith.constant 0 : index
    %c0_157 = arith.constant 0 : index
    %188 = vector.load %arg14[%c0_155, %c0_156, %c0_157] : memref<2x1x32xf32, #tpu.memory_space<vmem>>, vector<1x1x32xf32>
    %189 = vector.shape_cast %188 : vector<1x1x32xf32> to vector<1x32xf32>
    %190 = vector.broadcast %189 : vector<1x32xf32> to vector<8x32xf32>
    %191 = arith.addf %187, %190 : vector<8x32xf32>
    %cst_158 = arith.constant 0.000000e+00 : f32
    %192 = vector.broadcast %cst_158 : f32 to vector<8x32xf32>
    %193 = arith.maximumf %191, %192 : vector<8x32xf32>
    %c0_159 = arith.constant 0 : index
    %c0_160 = arith.constant 0 : index
    %c0_161 = arith.constant 0 : index
    %194 = vector.load %arg19[%c0_159, %c0_160, %c0_161] : memref<2x32x32xf32, #tpu.memory_space<vmem>>, vector<1x32x32xf32>
    %195 = vector.shape_cast %194 : vector<1x32x32xf32> to vector<32x32xf32>
    %cst_162 = arith.constant dense<0.000000e+00> : vector<8x32xf32>
    %196 = tpu.matmul %193, %195, %cst_162 {dimension_numbers = #tpu.dot_dimension_numbers<[1], [0], [0], [1], [0, 0, 1, 1], [], []>} : vector<8x32xf32>, vector<32x32xf32>, vector<8x32xf32> -> vector<8x32xf32>
    %c0_163 = arith.constant 0 : index
    %c0_164 = arith.constant 0 : index
    %c0_165 = arith.constant 0 : index
    %197 = vector.load %arg15[%c0_163, %c0_164, %c0_165] : memref<2x1x32xf32, #tpu.memory_space<vmem>>, vector<1x1x32xf32>
    %198 = vector.shape_cast %197 : vector<1x1x32xf32> to vector<1x32xf32>
    %199 = vector.broadcast %198 : vector<1x32xf32> to vector<8x32xf32>
    %200 = arith.addf %196, %199 : vector<8x32xf32>
    %cst_166 = arith.constant 0.000000e+00 : f32
    %201 = vector.broadcast %cst_166 : f32 to vector<8x32xf32>
    %202 = arith.maximumf %200, %201 : vector<8x32xf32>
    %c0_167 = arith.constant 0 : index
    %c0_168 = arith.constant 0 : index
    %c0_169 = arith.constant 0 : index
    %203 = vector.load %arg17[%c0_167, %c0_168, %c0_169] : memref<2x1x32xf32, #tpu.memory_space<vmem>>, vector<1x1x32xf32>
    %204 = vector.shape_cast %203 : vector<1x1x32xf32> to vector<1x32xf32>
    %c0_170 = arith.constant 0 : index
    %c0_171 = arith.constant 0 : index
    %c0_172 = arith.constant 0 : index
    %205 = vector.load %arg16[%c0_170, %c0_171, %c0_172] : memref<2x1x32xf32, #tpu.memory_space<vmem>>, vector<1x1x32xf32>
    %206 = vector.shape_cast %205 : vector<1x1x32xf32> to vector<1x32xf32>
    %cst_173 = arith.constant dense<0.000000e+00> : vector<8x32xf32>
    %207 = tpu.matmul %184, %202, %cst_173 {dimension_numbers = #tpu.dot_dimension_numbers<[1], [0], [0], [1], [0, 0, 1, 1], [], []>} : vector<8x8xf32>, vector<8x32xf32>, vector<8x32xf32> -> vector<8x32xf32>
    %208 = arith.subf %202, %207 : vector<8x32xf32>
    %209 = arith.mulf %208, %208 : vector<8x32xf32>
    %cst_174 = arith.constant dense<0.000000e+00> : vector<8x32xf32>
    %210 = tpu.matmul %184, %209, %cst_174 {dimension_numbers = #tpu.dot_dimension_numbers<[1], [0], [0], [1], [0, 0, 1, 1], [], []>} : vector<8x8xf32>, vector<8x32xf32>, vector<8x32xf32> -> vector<8x32xf32>
    %cst_175 = arith.constant 9.99999974E-6 : f32
    %211 = vector.broadcast %cst_175 : f32 to vector<8x32xf32>
    %212 = arith.addf %210, %211 : vector<8x32xf32>
    %213 = math.rsqrt %212 : vector<8x32xf32>
    %214 = arith.mulf %208, %213 : vector<8x32xf32>
    %215 = vector.broadcast %204 : vector<1x32xf32> to vector<8x32xf32>
    %216 = arith.mulf %214, %215 : vector<8x32xf32>
    %217 = vector.broadcast %206 : vector<1x32xf32> to vector<8x32xf32>
    %218 = arith.addf %216, %217 : vector<8x32xf32>
    %219 = arith.addf %183, %218 : vector<8x32xf32>
    %c1_176 = arith.constant 1 : index
    %c0_177 = arith.constant 0 : index
    %c0_178 = arith.constant 0 : index
    %220 = vector.load %arg18[%c1_176, %c0_177, %c0_178] : memref<2x32x32xf32, #tpu.memory_space<vmem>>, vector<1x32x32xf32>
    %221 = vector.shape_cast %220 : vector<1x32x32xf32> to vector<32x32xf32>
    %cst_179 = arith.constant dense<0.000000e+00> : vector<8x32xf32>
    %222 = tpu.matmul %219, %221, %cst_179 {dimension_numbers = #tpu.dot_dimension_numbers<[1], [0], [0], [1], [0, 0, 1, 1], [], []>} : vector<8x32xf32>, vector<32x32xf32>, vector<8x32xf32> -> vector<8x32xf32>
    %c1_180 = arith.constant 1 : index
    %c0_181 = arith.constant 0 : index
    %c0_182 = arith.constant 0 : index
    %223 = vector.load %arg14[%c1_180, %c0_181, %c0_182] : memref<2x1x32xf32, #tpu.memory_space<vmem>>, vector<1x1x32xf32>
    %224 = vector.shape_cast %223 : vector<1x1x32xf32> to vector<1x32xf32>
    %225 = vector.broadcast %224 : vector<1x32xf32> to vector<8x32xf32>
    %226 = arith.addf %222, %225 : vector<8x32xf32>
    %cst_183 = arith.constant 0.000000e+00 : f32
    %227 = vector.broadcast %cst_183 : f32 to vector<8x32xf32>
    %228 = arith.maximumf %226, %227 : vector<8x32xf32>
    %c1_184 = arith.constant 1 : index
    %c0_185 = arith.constant 0 : index
    %c0_186 = arith.constant 0 : index
    %229 = vector.load %arg19[%c1_184, %c0_185, %c0_186] : memref<2x32x32xf32, #tpu.memory_space<vmem>>, vector<1x32x32xf32>
    %230 = vector.shape_cast %229 : vector<1x32x32xf32> to vector<32x32xf32>
    %cst_187 = arith.constant dense<0.000000e+00> : vector<8x32xf32>
    %231 = tpu.matmul %228, %230, %cst_187 {dimension_numbers = #tpu.dot_dimension_numbers<[1], [0], [0], [1], [0, 0, 1, 1], [], []>} : vector<8x32xf32>, vector<32x32xf32>, vector<8x32xf32> -> vector<8x32xf32>
    %c1_188 = arith.constant 1 : index
    %c0_189 = arith.constant 0 : index
    %c0_190 = arith.constant 0 : index
    %232 = vector.load %arg15[%c1_188, %c0_189, %c0_190] : memref<2x1x32xf32, #tpu.memory_space<vmem>>, vector<1x1x32xf32>
    %233 = vector.shape_cast %232 : vector<1x1x32xf32> to vector<1x32xf32>
    %234 = vector.broadcast %233 : vector<1x32xf32> to vector<8x32xf32>
    %235 = arith.addf %231, %234 : vector<8x32xf32>
    %cst_191 = arith.constant 0.000000e+00 : f32
    %236 = vector.broadcast %cst_191 : f32 to vector<8x32xf32>
    %237 = arith.maximumf %235, %236 : vector<8x32xf32>
    %c1_192 = arith.constant 1 : index
    %c0_193 = arith.constant 0 : index
    %c0_194 = arith.constant 0 : index
    %238 = vector.load %arg17[%c1_192, %c0_193, %c0_194] : memref<2x1x32xf32, #tpu.memory_space<vmem>>, vector<1x1x32xf32>
    %239 = vector.shape_cast %238 : vector<1x1x32xf32> to vector<1x32xf32>
    %c1_195 = arith.constant 1 : index
    %c0_196 = arith.constant 0 : index
    %c0_197 = arith.constant 0 : index
    %240 = vector.load %arg16[%c1_195, %c0_196, %c0_197] : memref<2x1x32xf32, #tpu.memory_space<vmem>>, vector<1x1x32xf32>
    %241 = vector.shape_cast %240 : vector<1x1x32xf32> to vector<1x32xf32>
    %cst_198 = arith.constant dense<0.000000e+00> : vector<8x32xf32>
    %242 = tpu.matmul %184, %237, %cst_198 {dimension_numbers = #tpu.dot_dimension_numbers<[1], [0], [0], [1], [0, 0, 1, 1], [], []>} : vector<8x8xf32>, vector<8x32xf32>, vector<8x32xf32> -> vector<8x32xf32>
    %243 = arith.subf %237, %242 : vector<8x32xf32>
    %244 = arith.mulf %243, %243 : vector<8x32xf32>
    %cst_199 = arith.constant dense<0.000000e+00> : vector<8x32xf32>
    %245 = tpu.matmul %184, %244, %cst_199 {dimension_numbers = #tpu.dot_dimension_numbers<[1], [0], [0], [1], [0, 0, 1, 1], [], []>} : vector<8x8xf32>, vector<8x32xf32>, vector<8x32xf32> -> vector<8x32xf32>
    %cst_200 = arith.constant 9.99999974E-6 : f32
    %246 = vector.broadcast %cst_200 : f32 to vector<8x32xf32>
    %247 = arith.addf %245, %246 : vector<8x32xf32>
    %248 = math.rsqrt %247 : vector<8x32xf32>
    %249 = arith.mulf %243, %248 : vector<8x32xf32>
    %250 = vector.broadcast %239 : vector<1x32xf32> to vector<8x32xf32>
    %251 = arith.mulf %249, %250 : vector<8x32xf32>
    %252 = vector.broadcast %241 : vector<1x32xf32> to vector<8x32xf32>
    %253 = arith.addf %251, %252 : vector<8x32xf32>
    %254 = arith.addf %219, %253 : vector<8x32xf32>
    %c0_201 = arith.constant 0 : index
    %c0_202 = arith.constant 0 : index
    %255 = vector.load %arg29[%c0_201, %c0_202] : memref<32x128xf32, #tpu.memory_space<vmem>>, vector<32x128xf32>
    %cst_203 = arith.constant dense<0.000000e+00> : vector<8x128xf32>
    %256 = tpu.matmul %254, %255, %cst_203 {dimension_numbers = #tpu.dot_dimension_numbers<[1], [0], [0], [1], [0, 0, 1, 1], [], []>} : vector<8x32xf32>, vector<32x128xf32>, vector<8x128xf32> -> vector<8x128xf32>
    %c0_204 = arith.constant 0 : index
    %c0_205 = arith.constant 0 : index
    %257 = vector.load %arg28[%c0_204, %c0_205] : memref<1x128xf32, #tpu.memory_space<vmem>>, vector<1x128xf32>
    %258 = vector.broadcast %257 : vector<1x128xf32> to vector<8x128xf32>
    %259 = arith.addf %256, %258 : vector<8x128xf32>
    %c0_206 = arith.constant 0 : index
    %c0_207 = arith.constant 0 : index
    %260 = vector.load %arg31[%c0_206, %c0_207] : memref<8x128xf32, #tpu.memory_space<vmem>>, vector<8x128xf32>
    tpu.vector_store %arg31[%c0_206, %c0_207], %259 {strides = array<i32>} : memref<8x128xf32, #tpu.memory_space<vmem>>, vector<8x128xf32>,
    return
  }
  func.func @transform_0(%arg0: i32) -> (i32, i32) {
    %c0_i32 = arith.constant 0 : i32
    %c0_i32_0 = arith.constant 0 : i32
    return %arg0, %c0_i32 : i32, i32
  }
  func.func @transform_1(%arg0: i32) -> (i32, i32) {
    %c0_i32 = arith.constant 0 : i32
    %c0_i32_0 = arith.constant 0 : i32
    %c0_i32_1 = arith.constant 0 : i32
    return %c0_i32, %c0_i32_0 : i32, i32
  }
  func.func @transform_2(%arg0: i32) -> (i32, i32) {
    %c0_i32 = arith.constant 0 : i32
    %c0_i32_0 = arith.constant 0 : i32
    %c0_i32_1 = arith.constant 0 : i32
    return %c0_i32, %c0_i32_0 : i32, i32
  }
  func.func @transform_3(%arg0: i32) -> (i32, i32) {
    %c0_i32 = arith.constant 0 : i32
    %c0_i32_0 = arith.constant 0 : i32
    %c0_i32_1 = arith.constant 0 : i32
    return %c0_i32, %c0_i32_0 : i32, i32
  }
  func.func @transform_4(%arg0: i32) -> (i32, i32) {
    %c0_i32 = arith.constant 0 : i32
    %c0_i32_0 = arith.constant 0 : i32
    %c0_i32_1 = arith.constant 0 : i32
    return %c0_i32, %c0_i32_0 : i32, i32
  }
  func.func @transform_5(%arg0: i32) -> (i32, i32) {
    %c0_i32 = arith.constant 0 : i32
    %c0_i32_0 = arith.constant 0 : i32
    %c0_i32_1 = arith.constant 0 : i32
    return %c0_i32, %c0_i32_0 : i32, i32
  }
  func.func @transform_6(%arg0: i32) -> (i32, i32) {
    %c0_i32 = arith.constant 0 : i32
    %c0_i32_0 = arith.constant 0 : i32
    %c0_i32_1 = arith.constant 0 : i32
    return %c0_i32, %c0_i32_0 : i32, i32
  }
  func.func @transform_7(%arg0: i32) -> (i32, i32, i32) {
    %c0_i32 = arith.constant 0 : i32
    %c0_i32_0 = arith.constant 0 : i32
    %c0_i32_1 = arith.constant 0 : i32
    %c0_i32_2 = arith.constant 0 : i32
    return %c0_i32, %c0_i32_0, %c0_i32_1 : i32, i32, i32
  }
  func.func @transform_8(%arg0: i32) -> (i32, i32, i32) {
    %c0_i32 = arith.constant 0 : i32
    %c0_i32_0 = arith.constant 0 : i32
    %c0_i32_1 = arith.constant 0 : i32
    %c0_i32_2 = arith.constant 0 : i32
    return %c0_i32, %c0_i32_0, %c0_i32_1 : i32, i32, i32
  }
  func.func @transform_9(%arg0: i32) -> (i32, i32, i32) {
    %c0_i32 = arith.constant 0 : i32
    %c0_i32_0 = arith.constant 0 : i32
    %c0_i32_1 = arith.constant 0 : i32
    %c0_i32_2 = arith.constant 0 : i32
    return %c0_i32, %c0_i32_0, %c0_i32_1 : i32, i32, i32
  }
  func.func @transform_10(%arg0: i32) -> (i32, i32, i32) {
    %c0_i32 = arith.constant 0 : i32
    %c0_i32_0 = arith.constant 0 : i32
    %c0_i32_1 = arith.constant 0 : i32
    %c0_i32_2 = arith.constant 0 : i32
    return %c0_i32, %c0_i32_0, %c0_i32_1 : i32, i32, i32
  }
  func.func @transform_11(%arg0: i32) -> (i32, i32, i32) {
    %c0_i32 = arith.constant 0 : i32
    %c0_i32_0 = arith.constant 0 : i32
    %c0_i32_1 = arith.constant 0 : i32
    %c0_i32_2 = arith.constant 0 : i32
    return %c0_i32, %c0_i32_0, %c0_i32_1 : i32, i32, i32
  }
  func.func @transform_12(%arg0: i32) -> (i32, i32, i32) {
    %c0_i32 = arith.constant 0 : i32
    %c0_i32_0 = arith.constant 0 : i32
    %c0_i32_1 = arith.constant 0 : i32
    %c0_i32_2 = arith.constant 0 : i32
    return %c0_i32, %c0_i32_0, %c0_i32_1 : i32, i32, i32
  }
  func.func @transform_13(%arg0: i32) -> (i32, i32, i32) {
    %c0_i32 = arith.constant 0 : i32
    %c0_i32_0 = arith.constant 0 : i32
    %c0_i32_1 = arith.constant 0 : i32
    %c0_i32_2 = arith.constant 0 : i32
    return %c0_i32, %c0_i32_0, %c0_i32_1 : i32, i32, i32
  }
  func.func @transform_14(%arg0: i32) -> (i32, i32, i32) {
    %c0_i32 = arith.constant 0 : i32
    %c0_i32_0 = arith.constant 0 : i32
    %c0_i32_1 = arith.constant 0 : i32
    %c0_i32_2 = arith.constant 0 : i32
    return %c0_i32, %c0_i32_0, %c0_i32_1 : i32, i32, i32
  }
  func.func @transform_15(%arg0: i32) -> (i32, i32, i32) {
    %c0_i32 = arith.constant 0 : i32
    %c0_i32_0 = arith.constant 0 : i32
    %c0_i32_1 = arith.constant 0 : i32
    %c0_i32_2 = arith.constant 0 : i32
    return %c0_i32, %c0_i32_0, %c0_i32_1 : i32, i32, i32
  }
  func.func @transform_16(%arg0: i32) -> (i32, i32, i32) {
    %c0_i32 = arith.constant 0 : i32
    %c0_i32_0 = arith.constant 0 : i32
    %c0_i32_1 = arith.constant 0 : i32
    %c0_i32_2 = arith.constant 0 : i32
    return %c0_i32, %c0_i32_0, %c0_i32_1 : i32, i32, i32
  }
  func.func @transform_17(%arg0: i32) -> (i32, i32, i32) {
    %c0_i32 = arith.constant 0 : i32
    %c0_i32_0 = arith.constant 0 : i32
    %c0_i32_1 = arith.constant 0 : i32
    %c0_i32_2 = arith.constant 0 : i32
    return %c0_i32, %c0_i32_0, %c0_i32_1 : i32, i32, i32
  }
  func.func @transform_18(%arg0: i32) -> (i32, i32, i32) {
    %c0_i32 = arith.constant 0 : i32
    %c0_i32_0 = arith.constant 0 : i32
    %c0_i32_1 = arith.constant 0 : i32
    %c0_i32_2 = arith.constant 0 : i32
    return %c0_i32, %c0_i32_0, %c0_i32_1 : i32, i32, i32
  }
  func.func @transform_19(%arg0: i32) -> (i32, i32, i32) {
    %c0_i32 = arith.constant 0 : i32
    %c0_i32_0 = arith.constant 0 : i32
    %c0_i32_1 = arith.constant 0 : i32
    %c0_i32_2 = arith.constant 0 : i32
    return %c0_i32, %c0_i32_0, %c0_i32_1 : i32, i32, i32
  }
  func.func @transform_20(%arg0: i32) -> (i32, i32, i32) {
    %c0_i32 = arith.constant 0 : i32
    %c0_i32_0 = arith.constant 0 : i32
    %c0_i32_1 = arith.constant 0 : i32
    %c0_i32_2 = arith.constant 0 : i32
    return %c0_i32, %c0_i32_0, %c0_i32_1 : i32, i32, i32
  }
  func.func @transform_21(%arg0: i32) -> (i32, i32, i32) {
    %c0_i32 = arith.constant 0 : i32
    %c0_i32_0 = arith.constant 0 : i32
    %c0_i32_1 = arith.constant 0 : i32
    %c0_i32_2 = arith.constant 0 : i32
    return %c0_i32, %c0_i32_0, %c0_i32_1 : i32, i32, i32
  }
  func.func @transform_22(%arg0: i32) -> (i32, i32, i32) {
    %c0_i32 = arith.constant 0 : i32
    %c0_i32_0 = arith.constant 0 : i32
    %c0_i32_1 = arith.constant 0 : i32
    %c0_i32_2 = arith.constant 0 : i32
    return %c0_i32, %c0_i32_0, %c0_i32_1 : i32, i32, i32
  }
  func.func @transform_23(%arg0: i32) -> (i32, i32) {
    %c0_i32 = arith.constant 0 : i32
    %c0_i32_0 = arith.constant 0 : i32
    %c0_i32_1 = arith.constant 0 : i32
    return %c0_i32, %c0_i32_0 : i32, i32
  }
  func.func @transform_24(%arg0: i32) -> (i32, i32) {
    %c0_i32 = arith.constant 0 : i32
    %c0_i32_0 = arith.constant 0 : i32
    %c0_i32_1 = arith.constant 0 : i32
    return %c0_i32, %c0_i32_0 : i32, i32
  }
  func.func @transform_25(%arg0: i32) -> (i32, i32) {
    %c0_i32 = arith.constant 0 : i32
    %c0_i32_0 = arith.constant 0 : i32
    %c0_i32_1 = arith.constant 0 : i32
    return %c0_i32, %c0_i32_0 : i32, i32
  }
  func.func @transform_26(%arg0: i32) -> (i32, i32) {
    %c0_i32 = arith.constant 0 : i32
    %c0_i32_0 = arith.constant 0 : i32
    %c0_i32_1 = arith.constant 0 : i32
    return %c0_i32, %c0_i32_0 : i32, i32
  }
  func.func @transform_27(%arg0: i32) -> (i32, i32) {
    %c0_i32 = arith.constant 0 : i32
    %c0_i32_0 = arith.constant 0 : i32
    %c0_i32_1 = arith.constant 0 : i32
    return %c0_i32, %c0_i32_0 : i32, i32
  }
  func.func @transform_28(%arg0: i32) -> (i32, i32) {
    %c0_i32 = arith.constant 0 : i32
    %c0_i32_0 = arith.constant 0 : i32
    %c0_i32_1 = arith.constant 0 : i32
    return %c0_i32, %c0_i32_0 : i32, i32
  }
  func.func @transform_29(%arg0: i32) -> (i32, i32) {
    %c0_i32 = arith.constant 0 : i32
    %c0_i32_0 = arith.constant 0 : i32
    %c0_i32_1 = arith.constant 0 : i32
    return %c0_i32, %c0_i32_0 : i32, i32
  }
  func.func @transform_30(%arg0: i32) -> (i32, i32) {
    %c0_i32 = arith.constant 0 : i32
    %c0_i32_0 = arith.constant 0 : i32
    return %arg0, %c0_i32 : i32, i32
  }
}

</mosaic_0001>

<bundles_post_ra>
// kernel: encoder_forward.1
= control target key start
LH: loop header
LB: loop body
LE: loop exit
PB: predicated region body
PF: predicated region fallthrough
CT: control target
= control target key end

     0   :  { %s5240_s6 = smov 1   ;;  %s5241_s10 = smov 2   ;;  %s5758_s0 = inlined_call_operand.smem [shape: u32[31], index: -1, kind: input, shape index: {}] }
   0x1   :  { %s5283_s5 = sld [smem:[%s5758_s0]]   ;;  %s5242_s14 = smov 3  }
   0x2   :  { %s5288_s9 = sld [smem:[%s5758_s0 + %s5240_s6]]   ;;  %s5243_s18 = smov 4  }
   0x3   :  { %s5293_s13 = sld [smem:[%s5758_s0 + %s5241_s10]]   ;;  %s5244_s22 = smov 5  }
   0x4   :  { %s5298_s17 = sld [smem:[%s5758_s0 + %s5242_s14]]   ;;  %s5245_s26 = smov 6  }
   0x5   :  { %s5303_s21 = sld [smem:[%s5758_s0 + %s5243_s18]]   ;;  %s5246_s30 = smov 7  }
   0x6   :  { %s5308_s25 = sld [smem:[%s5758_s0 + %s5244_s22]]   ;;  %s5247_s4 = smov 8  }
   0x7   :  { %s5313_s29 = sld [smem:[%s5758_s0 + %s5245_s26]]   ;;  %s5248_s10 = smov 9  }
   0x8   :  { %5774 = sst [smem:[#allocation2_spill]] %s5288_s9  ;;  %s5249_s15 = smov 10  }
   0x9   :  { %5775 = sst [smem:[#allocation3_spill]] %s5293_s13  ;;  %s5250_s20 = smov 11  }
   0xa   :  { %s5318_s3 = sld [smem:[%s5758_s0 + %s5246_s30]]   ;;  %s5251_s26 = smov 12  }
   0xb   :  { %s5323_s8 = sld [smem:[%s5758_s0 + %s5247_s4]]   ;;  %s5252_s1 = smov 13  }
   0xc   :  { %s5328_s14 = sld [smem:[%s5758_s0 + %s5248_s10]]   ;;  %s5253_s7 = smov 14  }
   0xd   :  { %s5333_s19 = sld [smem:[%s5758_s0 + %s5249_s15]]   ;;  %s5254_s15 = smov 15  }
   0xe   :  { %s5338_s24 = sld [smem:[%s5758_s0 + %s5250_s20]]   ;;  %s5255_s22 = smov 16  }
   0xf   :  { %s5343_s30 = sld [smem:[%s5758_s0 + %s5251_s26]]   ;;  %s5256_s28 = smov 17  }
  0x10   :  { %5776 = sst [smem:[#allocation4_spill]] %s5318_s3 }
  0x11   :  { %5777 = sst [smem:[#allocation5_spill]] %s5323_s8 }
  0x12   :  { %5778 = sst [smem:[#allocation6_spill]] %s5328_s14 }
  0x13   :  { %5779 = sst [smem:[#allocation7_spill]] %s5333_s19 }
  0x14   :  { %s5348_s6 = sld [smem:[%s5758_s0 + %s5252_s1]]  }
  0x15   :  { %s5353_s12 = sld [smem:[%s5758_s0 + %s5253_s7]]   ;;  %s5257_s7 = smov 18  }
  0x16   :  { %s5358_s20 = sld [smem:[%s5758_s0 + %s5254_s15]]   ;;  %s5258_s15 = smov 19  }
  0x17   :  { %s5363_s27 = sld [smem:[%s5758_s0 + %s5255_s22]]   ;;  %s5259_s22 = smov 20  }
  0x18   :  { %s5368_s4 = sld [smem:[%s5758_s0 + %s5256_s28]]   ;;  %s5260_s28 = smov 21  }
  0x1a   :  { %5780 = sst [smem:[#allocation8_spill]] %s5348_s6 }
  0x1b   :  { %5781 = sst [smem:[#allocation9_spill]] %s5353_s12 }
  0x1c   :  { %5782 = sst [smem:[#allocation10_spill]] %s5358_s20 }
  0x1d   :  { %5783 = sst [smem:[#allocation11_spill]] %s5363_s27 }
  0x1e   :  { %5784 = sst [smem:[#allocation12_spill]] %s5368_s4 }
  0x1f   :  { %s5373_s12 = sld [smem:[%s5758_s0 + %s5257_s7]]   ;;  %s5261_s7 = smov 22  }
  0x20   :  { %s5378_s20 = sld [smem:[%s5758_s0 + %s5258_s15]]   ;;  %s5262_s15 = smov 23  }
  0x21   :  { %s5383_s27 = sld [smem:[%s5758_s0 + %s5259_s22]]   ;;  %s5263_s22 = smov 24  }
  0x22   :  { %s5388_s6 = sld [smem:[%s5758_s0 + %s5260_s28]]   ;;  %s5264_s28 = smov 25  }
  0x23   :  { %s5398_s4 = sld [smem:[%s5758_s0 + %s5262_s15]]   ;;  %s5266_s15 = smov 27  }
  0x24   :  { %s5403_s9 = sld [smem:[%s5758_s0 + %s5263_s22]]   ;;  %s5267_s22 = smov 28  }
  0x25   :  { %5785 = sst [smem:[#allocation13_spill]] %s5373_s12 }
  0x26   :  { %s5393_s12 = sld [smem:[%s5758_s0 + %s5261_s7]]   ;;  %s5265_s7 = smov 26  }
  0x27   :  { %s5413_s14 = sld [smem:[%s5758_s0 + %s5265_s7]]   ;;  %s5269_s7 = smov 30  }
  0x28   :  { %5786 = sst [smem:[#allocation14_spill]] %s5388_s6 }
  0x29   :  { %s5408_s6 = sld [smem:[%s5758_s0 + %s5264_s28]]   ;;  %s5268_s28 = smov 29  }
  0x2a   :  { %s5418_s19 = sld [smem:[%s5758_s0 + %s5266_s15]]   ;;  %s5435_s15 = smov 0  }
  0x2b   :  { %s5423_s8 = sld [smem:[%s5758_s0 + %s5267_s22]]  }
  0x2c   :  { %s5428_s13 = sld [smem:[%s5758_s0 + %s5268_s28]]  }
  0x2d   :  { %s5433_s3 = sld [smem:[%s5758_s0 + %s5269_s7]]  }
  0x2e LB: > { %s5441_s16 = sadd.s32 4294967295, %s5238_s15   ;;  %p4570_p0 = scmp.ge.s32.totalorder %s5238_s15, 1  ;;  %s5238_s15 = sphi %s5435_s15, %s71_s15  }
  0x2f   : > { %p844_p1 = scmp.lt.s32.totalorder %s5238_s15, 3 }
  0x31   : > { %p845_p2 = pnand %p4570_p0, %p844_p1 }
  0x32   : > { %s4571_s0 = sshll.u32 (!%p845_p2), %s5441_s16, 1  ;;  %s5270_s23 = smov (!%p845_p2), 96  }
  0x33   : > { %848 = sbr.rel (%p845_p2) target bundleno = 5814 (0x16b6), region = 140  ;;  %p922_p3 = scmp.lt.s32.totalorder (!%p845_p2), %s4571_s0, 3 }
  0x34   : > { %s5271_s26 = smov (!%p845_p2), 64   ;;  %s5272_s28 = smov (!%p845_p2), 32  }
  0x35   : > { %s5787_s1 = sld [smem:[#allocation4_spill]] (!%p845_p2)  ;;  %p927_p4 = scmp.lt.s32.totalorder (!%p845_p2), %s5441_s16, 1 }
  0x36   : > { %s5788_s2 = sld [smem:[#allocation3_spill]] (!%p845_p2) }
  0x37   : > { %s5789_s7 = sld [smem:[#allocation5_spill]] (!%p845_p2) }
  0x38   : > { %vm948_vm0 = vcmask 1043456   ;;  %v1027_v0 = vld [vmem:[%s5308_s25] sm:$0xf]  ;;  %s5801_s0 = smov (!%p922_p3, %s4571_s0), 3  ;;  %vm941_vm1 = vcmask 31744   ;;  %vm1109_vm2 = vcmask 130048  }
  0x39   : > { %4871 = vmatprep.subr.msk.mxu1 %vm948_vm0, %v1027_v0  ;;  %s4572_s18 = sshll.u32 %s5801_s0, 3  ;;  %v1107_v3 = vld [vmem:[%s5378_s20] sm:$0xff]  ;;  %v1108_v6 = vld [vmem:[%s5378_s20 + $0x8] sm:$0xff]  ;;  %v4584_v7 = vld [vmem:[%s5378_s20 + $0x10] sm:$0xff]  ;;  %vm1299_vm3 = vcmask 261120   ;;  %s5790_s10 = sld [smem:[#allocation7_spill]] }
  0x3a   : > { %4872 = vmatpush3.msk.msra.mxu1 %vm948_vm0, %v1027_v0  ;;  %s925_s22 = scalar_lea.vmem %s5283_s5, %s4572_s18  ;;  %v933_v8 = vld [vmem:[%s5413_s14] sm:$0xf]  ;;  %v4585_v11 = vld [vmem:[%s5378_s20 + $0x18] sm:$0xff]  ;;  %v1297_v14 = vld [vmem:[%s5403_s9 + $0x10] sm:$0xff]  ;;  %s5791_s11 = sld [smem:[#allocation6_spill]]  ;;  %vm5274_vm4 = vmmov 0  }
  0x3b   : > { %v931_v1 = vld [vmem:[%s925_s22] sm:$0xff]  ;;  %v932_v2 = vld [vmem:[%s925_s22 + $0x8] sm:$0xff]  ;;  %4866 = vmatprep.subr.msk.mxu0 %vm948_vm0, %v933_v8  ;;  %v1298_v13 = vld [vmem:[%s5403_s9 + $0x18] sm:$0xff]  ;;  %s5792_s0 = sld [smem:[#allocation14_spill]]  ;;  %vm3567_vm5 = vcmask 64512   ;;  %s5803_s16 = smov (!%p927_p4, %s5441_s16), 1 }
  0x3c   : > { %4873 = vmatprep.mubr.msk.f32.mxu1 %vm941_vm1, %v931_v1  ;;  %4868 = vmatprep.mubr.msk.f32.mxu0 %vm941_vm1, %v931_v1  ;;  %v1383_v12 = vld [vmem:[%s5313_s29] sm:$0xf]  ;;  %v1296_v15 = vld [vmem:[%s5403_s9 + $0x8] sm:$0xff]  ;;  %v4596_v32 = vld [vmem:[%s5393_s12 + $0x10] sm:$0xff]  ;;  %s5793_s18 = sld [smem:[#allocation2_spill]] }
  0x3d   : > { %4874 = vmatmul.mubr.msk.f32.vlgmr.msra.gmra.mxu1 %vm941_vm1, %v932_v2  ;;  %4867 = vmatpush3.msk.msra.mxu0 %vm948_vm0, %v933_v8  ;;  %v1295_v16 = vld [vmem:[%s5403_s9] sm:$0xff]  ;;  %v1464_v31 = vld [vmem:[%s5393_s12 + $0x8] sm:$0xff]  ;;  %v4597_v37 = vld [vmem:[%s5393_s12 + $0x18] sm:$0xff]  ;;  %s5794_s22 = sld [smem:[#allocation12_spill]] }
  0x3e   : > { %4880 = vmatprep.mubr.msk.f32.mxu1 %vm1109_vm2, %v1107_v3  ;;  %4869 = vmatmul.mubr.msk.f32.vlgmr.msra.gmra.mxu0 %vm941_vm1, %v932_v2  ;;  %v1463_v17 = vld [vmem:[%s5393_s12] sm:$0xff]  ;;  %v4604_v38 = vld [vmem:[%s5393_s12 + $0x30] sm:$0xff]  ;;  %v4601_v41 = vld [vmem:[%s5393_s12 + $0x28] sm:$0xff] }
  0x3f   : > { %4890 = vmatprep.subr.mxu0 %v1298_v13  ;;  %v4583_v19 = vld [vmem:[%s5298_s17] ss:$0 sm:$0xff]  ;;  %v4605_v43 = vld [vmem:[%s5393_s12 + $0x38] sm:$0xff]  ;;  %v1836_v50 = vld [vmem:[%s5408_s6 + $0x10] sm:$0xff] }
  0x40   : > { %4891 = vmatpush3.msra.mxu0 %v1298_v13  ;;  %v4600_v33 = vld [vmem:[%s5393_s12 + $0x20] sm:$0xff]  ;;  %v1837_v48 = vld [vmem:[%s5408_s6 + $0x18] sm:$0xff]  ;;  %v1835_v52 = vld [vmem:[%s5408_s6 + $0x8] sm:$0xff] }
  0x41   : > { %4892 = vmatprep.subr.mxu0 %v1297_v14  ;;  %v4574_v45 = vld [vmem:[%s5398_s4] ss:$0 sm:$0xff]  ;;  %v1924_v54 = vld [vmem:[%s5338_s24 + $0x18] sm:$0xff] }
  0x42   : > { %4893 = vmatpush3.msra.mxu0 %v1297_v14  ;;  %v1834_v53 = vld [vmem:[%s5408_s6] sm:$0xff] }
  0x43   : > { %4894 = vmatprep.subr.mxu0 %v1296_v15  ;;  %v4595_v56 = vld [vmem:[%s5303_s21] ss:$0 sm:$0xff] }
  0x44   : > { %4895 = vmatpush3.msra.mxu0 %v1296_v15  ;;  %v1921_v13 = vld [vmem:[%s5338_s24] sm:$0xff] }
  0x45   : > { %4896 = vmatprep.subr.mxu0 %v1295_v16 }
  0x46   : > { %4897 = vmatpush3.msra.mxu0 %v1295_v16 }
  0xfd   : > { %v4875_v4 = vpop.f32.mrf.mxu1 }
  0xfe   : > { %1206 = vrot.lane.b32.xlu0 %v4875_v4, %s5270_s23  ;;  %4876 = vmatprep.subr.mxu1 %v4875_v4  ;;  %v4870_v44 = vpop.f32.mrf.mxu0 }
  0xff   : > { %v1098_v5 = vpop.f32.mrf.mxu1  ;;  %4877 = vmatpush3.msra.mxu1 %v4875_v4  ;;  %v1024_v47 = vadd.f32 %v4870_v44, %v4574_v45 }
 0x100   : > { %4878 = vmatprep.subr.mxu1 %v1098_v5  ;;  %v1018_v46 = vpop.f32.mrf.mxu0 }
 0x101   : > { %4879 = vmatpush3.msra.mxu1 %v1098_v5  ;;  %v1019_v14 = vadd.f32 %v4574_v45, %v1018_v46 }
 0x102   : > { %1204 = vrot.lane.b32.xlu0 %v1098_v5, %s5270_s23  ;;  %4881 = vmatmul.mubr.msk.f32.vlgmr.msra.gmra.mxu1 %vm1109_vm2, %v1108_v6 }
 0x103   : > { %4887 = vmatprep.mubr.msk.f32.mxu1 %vm1109_vm2, %v4584_v7 }
 0x170   : > { %v1207_v9 = vpop.permute.xlu0 %1206 }
 0x171   : > { %4883 = vmatprep.subr.mxu1 %v1207_v9 }
 0x172   : > { %4884 = vmatpush3.msra.mxu1 %v1207_v9 }
 0x174   : > { %v1205_v10 = vpop.permute.xlu0 %1204 }
 0x175   : > { %4885 = vmatprep.subr.mxu1 %v1205_v10 }
 0x176   : > { %4886 = vmatpush3.msra.mxu1 %v1205_v10 }
 0x177   : > { %4888 = vmatmul.mubr.msk.f32.vlgmr.msra.gmra.mxu1 %vm1109_vm2, %v4585_v11  ;;  %4901 = vmatprep.subr.msk.mxu1 %vm948_vm0, %v1383_v12  ;;  %v1923_v11 = vld [vmem:[%s5338_s24 + $0x10] sm:$0xff] }
 0x178   : > { %4902 = vmatpush3.msk.msra.mxu1 %vm948_vm0, %v1383_v12  ;;  %4903 = vmatprep.mubr.msk.f32.mxu1 %vm941_vm1, %v931_v1  ;;  %v1922_v12 = vld [vmem:[%s5338_s24 + $0x8] sm:$0xff] }
 0x17b   : > { %4904 = vmatmul.mubr.msk.f32.vlgmr.msra.gmra.mxu1 %vm941_vm1, %v932_v2 }
 0x17c   : > { %4910 = vmatprep.mubr.msk.f32.mxu1 %vm1109_vm2, %v1463_v17 }
 0x1c2   : > { %v4882_v18 = vpop.f32.mrf.mxu1 }
 0x1c3   : > { %v1198_v21 = vadd.f32 %v4882_v18, %v4583_v19 }
 0x1c4   : > { %v1182_v20 = vpop.f32.mrf.mxu1 }
 0x1c5   : > { %v1197_v23 = vadd.f32 %v4583_v19, %v1182_v20  ;;  %v5520_v20 = vld [vmem:[%s5383_s27] sm:$0xff] }
 0x237   : > { %v4889_v22 = vpop.f32.mrf.mxu1 }
 0x238   : > { %v1292_v24 = vadd.f32 %v4889_v22, %v1198_v21  ;;  %v5525_v21 = vld [vmem:[%s5383_s27 + $0x10] sm:$0xff] }
 0x239   : > { %v1282_v25 = vpop.f32.mrf.mxu1 }
 0x23a   : > { %v1291_v26 = vadd.f32 %v1282_v25, %v1197_v23  ;;  %v1294_v29 = vmax.f32 %v1292_v24, 0.0  ;;  %v5531_v24 = vld [vmem:[%s5383_s27 + $0x8] sm:$0xff]  ;;  %v5535_v25 = vld [vmem:[%s5383_s27 + $0x20] sm:$0xff] }
 0x23b   : > { %v4905_v27 = vpop.f32.mrf.mxu1 }
 0x23c   : > { %v1293_v28 = vmax.f32 %v1291_v26, 0.0  ;;  %1653 = vrot.lane.b32.xlu0 %v4905_v27, %s5271_s26  ;;  %1561 = vrot.lane.b32.xlu1 %v4905_v27, %s5270_s23 }
 0x23d   : > { %4906 = vmatprep.subr.mxu1 %v4905_v27  ;;  %v1454_v30 = vpop.f32.mrf.mxu1 }
 0x23e   : > { %4907 = vmatpush3.msra.mxu1 %v4905_v27  ;;  %4898 = vmatprep.mubr.msk.f32.mxu0 %vm1299_vm3, %v1293_v28  ;;  %v5544_v28 = vld [vmem:[%s5383_s27 + $0x18] sm:$0xff] }
 0x23f   : > { %4908 = vmatprep.subr.mxu1 %v1454_v30  ;;  %4899 = vmatmul.mubr.msk.f32.vlgmr.msra.gmra.mxu0 %vm1299_vm3, %v1294_v29 }
 0x240   : > { %4909 = vmatpush3.msra.mxu1 %v1454_v30  ;;  %1745 = vrot.lane.b32.xlu0 %v4905_v27, %s5272_s28 }
 0x241   : > { %1559 = vrot.lane.b32.xlu1 %v1454_v30, %s5270_s23  ;;  %4911 = vmatmul.mubr.msk.f32.vlgmr.msra.gmra.mxu1 %vm1109_vm2, %v1464_v31  ;;  %v5549_v31 = vld [vmem:[%s5383_s27 + $0x28] sm:$0xff] }
 0x242   : > { %4917 = vmatprep.mubr.msk.f32.mxu0 %vm1109_vm2, %v4596_v32  ;;  %4924 = vmatprep.mubr.msk.f32.mxu1 %vm1109_vm2, %v4600_v33  ;;  %v2289_v32 = vld [vmem:[%s5343_s30 + $0x18] sm:$0xff]  ;;  %v2288_v33 = vld [vmem:[%s5343_s30 + $0x10] sm:$0xff] }
 0x245   : > { %1651 = vrot.lane.b32.xlu1 %v1454_v30, %s5271_s26 }
 0x249   : > { %1743 = vrot.lane.b32.xlu1 %v1454_v30, %s5272_s28  ;;  %s5797_s28 = sld [smem:[#allocation9_spill]] }
 0x2ae   : > { %v1654_v34 = vpop.permute.xlu0 %1653  ;;  %v1562_v35 = vpop.permute.xlu1 %1561 }
 0x2af   : > { %4913 = vmatprep.subr.mxu0 %v1562_v35  ;;  %4920 = vmatprep.subr.mxu1 %v1654_v34 }
 0x2b0   : > { %4914 = vmatpush3.msra.mxu0 %v1562_v35  ;;  %4921 = vmatpush3.msra.mxu1 %v1654_v34  ;;  %v2287_v34 = vld [vmem:[%s5343_s30 + $0x8] sm:$0xff]  ;;  %v2286_v35 = vld [vmem:[%s5343_s30] sm:$0xff] }
 0x2b2   : > { %v1746_v39 = vpop.permute.xlu0 %1745 }
 0x2b3   : > { %v1560_v36 = vpop.permute.xlu1 %1559 }
 0x2b4   : > { %4915 = vmatprep.subr.mxu0 %v1560_v36 }
 0x2b5   : > { %4916 = vmatpush3.msra.mxu0 %v1560_v36 }
 0x2b6   : > { %4927 = vmatprep.subr.mxu0 %v1746_v39  ;;  %4918 = vmatmul.mubr.msk.f32.vlgmr.msra.gmra.mxu0 %vm1109_vm2, %v4597_v37  ;;  %v4614_v37 = vld [vmem:[%s5787_s1] ss:$0 sm:$0xff] }
 0x2b7   : > { %v1652_v40 = vpop.permute.xlu1 %1651  ;;  %4928 = vmatpush3.msra.mxu0 %v1746_v39  ;;  %4931 = vmatprep.mubr.msk.f32.mxu0 %vm1109_vm2, %v4604_v38 }
 0x2b8   : > { %4922 = vmatprep.subr.mxu1 %v1652_v40 }
 0x2b9   : > { %4923 = vmatpush3.msra.mxu1 %v1652_v40 }
 0x2ba   : > { %4925 = vmatmul.mubr.msk.f32.vlgmr.msra.gmra.mxu1 %vm1109_vm2, %v4601_v41  ;;  %4934 = vmatprep.subr.mxu1 %v1837_v48 }
 0x2bb   : > { %v1744_v42 = vpop.permute.xlu1 %1743  ;;  %4935 = vmatpush3.msra.mxu1 %v1837_v48 }
 0x2bc   : > { %4929 = vmatprep.subr.mxu0 %v1744_v42  ;;  %4936 = vmatprep.subr.mxu1 %v1836_v50 }
 0x2bd   : > { %4930 = vmatpush3.msra.mxu0 %v1744_v42  ;;  %4937 = vmatpush3.msra.mxu1 %v1836_v50 }
 0x2be   : > { %4932 = vmatmul.mubr.msk.f32.vlgmr.msra.gmra.mxu0 %vm1109_vm2, %v4605_v43  ;;  %4938 = vmatprep.subr.mxu1 %v1835_v52 }
 0x2bf   : > { %4939 = vmatpush3.msra.mxu1 %v1835_v52  ;;  %4945 = vmatprep.subr.mxu0 %v1924_v54 }
 0x2c0   : > { %4940 = vmatprep.subr.mxu1 %v1834_v53  ;;  %4946 = vmatpush3.msra.mxu0 %v1924_v54 }
 0x2c1   : > { %4941 = vmatpush3.msra.mxu1 %v1834_v53  ;;  %4947 = vmatprep.subr.mxu0 %v1923_v11 }
 0x2c2   : > { %4948 = vmatpush3.msra.mxu0 %v1923_v11 }
 0x2c3   : > { %4949 = vmatprep.subr.mxu0 %v1922_v12 }
 0x2c4   : > { %4950 = vmatpush3.msra.mxu0 %v1922_v12 }
 0x2c5   : > { %4951 = vmatprep.subr.mxu0 %v1921_v13 }
 0x2c6   : > { %4952 = vmatpush3.msra.mxu0 %v1921_v13 }
 0x2ff   : > { %v4900_v49 = vpop.f32.mrf.mxu0 }
 0x300   : > { %v1382_v51 = vadd.f32 %v4900_v49, %v1024_v47 }
 0x301   : > { %v4912_v55 = vpop.f32.mrf.mxu1  ;;  %v1372_v57 = vpop.f32.mrf.mxu0 }
 0x302   : > { %v1553_v58 = vadd.f32 %v4912_v55, %v4595_v56  ;;  %v1381_v16 = vadd.f32 %v1372_v57, %v1019_v14  ;;  %v2625_v57 = vld [vmem:[%s5788_s2] sm:$0xff] }
 0x303   : > { %v1537_v59 = vpop.f32.mrf.mxu1 }
 0x304   : > { %v1552_v61 = vadd.f32 %v4595_v56, %v1537_v59  ;;  %v4627_v59 = vld [vmem:[%s5789_s7] ss:$0 sm:$0xff] }
 0x376   : > { %v4919_v60 = vpop.f32.mrf.mxu0 }
 0x377   : > { %v1647_v62 = vadd.f32 %v4919_v60, %v1553_v58 }
 0x378   : > { %v1637_v63 = vpop.f32.mrf.mxu0 }
 0x379   : > { %v1646_v1 = vadd.f32 %v1637_v63, %v1552_v61 }
 0x37a   : > { %v4926_v0 = vpop.f32.mrf.mxu1 }
 0x37b   : > { %v1739_v2 = vadd.f32 %v4926_v0, %v1647_v62 }
 0x37c   : > { %v1729_v3 = vpop.f32.mrf.mxu1 }
 0x37d   : > { %v1738_v5 = vadd.f32 %v1729_v3, %v1646_v1 }
 0x37e   : > { %v4933_v4 = vpop.f32.mrf.mxu0 }
 0x37f   : > { %v1831_v6 = vadd.f32 %v4933_v4, %v1739_v2 }
 0x380   : > { %v1821_v7 = vpop.f32.mrf.mxu0 }
 0x381   : > { %v1830_v8 = vadd.f32 %v1821_v7, %v1738_v5  ;;  %v1833_v10 = vmax.f32 %v1831_v6, 0.0 }
 0x383   : > { %v1832_v9 = vmax.f32 %v1830_v8, 0.0 }
 0x385   : > { %4942 = vmatprep.mubr.msk.f32.mxu1 %vm1299_vm3, %v1832_v9  ;;  %v2626_v9 = vld [vmem:[%s5788_s2 + $0x8] sm:$0xff] }
 0x386   : > { %4943 = vmatmul.mubr.msk.f32.vlgmr.msra.gmra.mxu1 %vm1299_vm3, %v1833_v10 }
 0x387   : > { %4960 = vmatprep.mubr.msk.f32.mxu1 %vm1109_vm2, %v5520_v20 }
 0x446   : > { %v4944_v15 = vpop.f32.mrf.mxu1 }
 0x447   : > { %v5513_v19 = vadd.f32 %v4944_v15, %v1382_v51 }
 0x448   : > { %v1910_v17 = vpop.f32.mrf.mxu1 }
 0x449   : > { %v5511_v18 = vadd.f32 %v1910_v17, %v1381_v16  ;;  %v4641_v16 = vld [vmem:[%s5338_s24 + $0x38] sm:$0xff]  ;;  %v4640_v17 = vld [vmem:[%s5338_s24 + $0x30] sm:$0xff] }
 0x44b   : > { %4953 = vmatprep.mubr.msk.f32.mxu0 %vm1299_vm3, %v5511_v18 }
 0x44c   : > { %4954 = vmatmul.mubr.msk.f32.vlgmr.msra.gmra.mxu0 %vm1299_vm3, %v5513_v19 }
 0x44d   : > { %4967 = vmatprep.mubr.msk.f32.mxu0 %vm1109_vm2, %v5525_v21 }
 0x50c   : > { %v4955_v22 = vpop.f32.mrf.mxu0 }
 0x50d   : > { %2105 = vrot.lane.b32.xlu0 %v4955_v22, %s5270_s23  ;;  %4956 = vmatprep.subr.mxu1 %v4955_v22 }
 0x50e   : > { %v1998_v23 = vpop.f32.mrf.mxu0  ;;  %4957 = vmatpush3.msra.mxu1 %v4955_v22 }
 0x50f   : > { %2103 = vrot.lane.b32.xlu1 %v1998_v23, %s5270_s23  ;;  %4958 = vmatprep.subr.mxu1 %v1998_v23 }
 0x510   : > { %4959 = vmatpush3.msra.mxu1 %v1998_v23 }
 0x511   : > { %2197 = vrot.lane.b32.xlu0 %v4955_v22, %s5271_s26  ;;  %4961 = vmatmul.mubr.msk.f32.vlgmr.msra.gmra.mxu1 %vm1109_vm2, %v5531_v24  ;;  %v4639_v22 = vld [vmem:[%s5338_s24 + $0x28] sm:$0xff] }
 0x512   : > { %4974 = vmatprep.mubr.msk.f32.mxu1 %vm1109_vm2, %v5535_v25 }
 0x513   : > { %2195 = vrot.lane.b32.xlu1 %v1998_v23, %s5271_s26  ;;  %v4638_v23 = vld [vmem:[%s5338_s24 + $0x20] sm:$0xff] }
 0x57f   : > { %v2106_v26 = vpop.permute.xlu0 %2105 }
 0x580   : > { %4963 = vmatprep.subr.mxu0 %v2106_v26 }
 0x581   : > { %4964 = vmatpush3.msra.mxu0 %v2106_v26  ;;  %v2104_v27 = vpop.permute.xlu1 %2103 }
 0x582   : > { %4965 = vmatprep.subr.mxu0 %v2104_v27 }
 0x583   : > { %v2198_v29 = vpop.permute.xlu0 %2197  ;;  %4966 = vmatpush3.msra.mxu0 %v2104_v27 }
 0x584   : > { %4968 = vmatmul.mubr.msk.f32.vlgmr.msra.gmra.mxu0 %vm1109_vm2, %v5544_v28  ;;  %4970 = vmatprep.subr.mxu1 %v2198_v29 }
 0x585   : > { %v2196_v30 = vpop.permute.xlu1 %2195  ;;  %4971 = vmatpush3.msra.mxu1 %v2198_v29  ;;  %4977 = vmatprep.subr.mxu0 %v2289_v32 }
 0x586   : > { %4972 = vmatprep.subr.mxu1 %v2196_v30  ;;  %4978 = vmatpush3.msra.mxu0 %v2289_v32  ;;  %v4636_v32 = vld [vmem:[%s5790_s10] ss:$0 sm:$0xff] }
 0x587   : > { %4973 = vmatpush3.msra.mxu1 %v2196_v30  ;;  %4979 = vmatprep.subr.mxu0 %v2288_v33 }
 0x588   : > { %4975 = vmatmul.mubr.msk.f32.vlgmr.msra.gmra.mxu1 %vm1109_vm2, %v5549_v31  ;;  %4980 = vmatpush3.msra.mxu0 %v2288_v33 }
 0x589   : > { %4992 = vmatprep.mubr.msk.f32.mxu1 %vm1109_vm2, %v5520_v20  ;;  %4981 = vmatprep.subr.mxu0 %v2287_v34 }
 0x58a   : > { %4982 = vmatpush3.msra.mxu0 %v2287_v34 }
 0x58b   : > { %4983 = vmatprep.subr.mxu0 %v2286_v35 }
 0x58c   : > { %4984 = vmatpush3.msra.mxu0 %v2286_v35  ;;  %v4637_v35 = vld [vmem:[%s5791_s11] ss:$0 sm:$0xff] }
 0x5d1   : > { %v4962_v36 = vpop.f32.mrf.mxu1 }
 0x5d2   : > { %v2097_v38 = vadd.f32 %v4962_v36, %v4614_v37 }
 0x5d3   : > { %v2081_v39 = vpop.f32.mrf.mxu1 }
 0x5d4   : > { %v2096_v41 = vadd.f32 %v4614_v37, %v2081_v39 }
 0x644   : > { %v4969_v40 = vpop.f32.mrf.mxu0 }
 0x645   : > { %v2191_v42 = vadd.f32 %v4969_v40, %v2097_v38 }
 0x646   : > { %v2181_v43 = vpop.f32.mrf.mxu0 }
 0x647   : > { %v2190_v45 = vadd.f32 %v2181_v43, %v2096_v41 }
 0x648   : > { %v4976_v44 = vpop.f32.mrf.mxu1 }
 0x649   : > { %v2283_v46 = vadd.f32 %v4976_v44, %v2191_v42 }
 0x64a   : > { %v2273_v47 = vpop.f32.mrf.mxu1 }
 0x64b   : > { %v2282_v48 = vadd.f32 %v2273_v47, %v2190_v45  ;;  %v2285_v50 = vmax.f32 %v2283_v46, 0.0  ;;  %v4654_v45 = vld [vmem:[%s5343_s30 + $0x30] sm:$0xff]  ;;  %v4653_v46 = vld [vmem:[%s5343_s30 + $0x28] sm:$0xff] }
 0x64d   : > { %v2284_v49 = vmax.f32 %v2282_v48, 0.0 }
 0x64f   : > { %4985 = vmatprep.mubr.msk.f32.mxu0 %vm1299_vm3, %v2284_v49  ;;  %v4647_v49 = vld [vmem:[%s5787_s1 + $0x1] ss:$0 sm:$0xff]  ;;  %s4573_s1 = sshll.u32 %s5803_s16, 3 }
 0x650   : > { %4986 = vmatmul.mubr.msk.f32.vlgmr.msra.gmra.mxu0 %vm1299_vm3, %v2285_v50  ;;  %s930_s2 = scalar_lea.vmem %s5433_s3, %s4573_s1 }
 0x651   : > { %5006 = vmatprep.mubr.msk.f32.mxu0 %vm1109_vm2, %v5535_v25 }
 0x710   : > { %v4987_v51 = vpop.f32.mrf.mxu0 }
 0x711   : > { %2459 = vrot.lane.b32.xlu0 %v4987_v51, %s5270_s23  ;;  %4988 = vmatprep.subr.mxu1 %v4987_v51 }
 0x712   : > { %v2363_v52 = vpop.f32.mrf.mxu0  ;;  %4989 = vmatpush3.msra.mxu1 %v4987_v51 }
 0x713   : > { %2457 = vrot.lane.b32.xlu1 %v2363_v52, %s5270_s23  ;;  %4990 = vmatprep.subr.mxu1 %v2363_v52 }
 0x714   : > { %4991 = vmatpush3.msra.mxu1 %v2363_v52 }
 0x715   : > { %2542 = vrot.lane.b32.xlu0 %v4987_v51, %s5271_s26  ;;  %4993 = vmatmul.mubr.msk.f32.vlgmr.msra.gmra.mxu1 %vm1109_vm2, %v5531_v24 }
 0x716   : > { %4999 = vmatprep.mubr.msk.f32.mxu1 %vm1109_vm2, %v5525_v21 }
 0x717   : > { %2540 = vrot.lane.b32.xlu1 %v2363_v52, %s5271_s26 }
 0x783   : > { %v2460_v53 = vpop.permute.xlu0 %2459 }
 0x784   : > { %4995 = vmatprep.subr.mxu1 %v2460_v53 }
 0x785   : > { %v2458_v54 = vpop.permute.xlu1 %2457  ;;  %4996 = vmatpush3.msra.mxu1 %v2460_v53 }
 0x786   : > { %4997 = vmatprep.subr.mxu1 %v2458_v54 }
 0x787   : > { %v2543_v55 = vpop.permute.xlu0 %2542  ;;  %4998 = vmatpush3.msra.mxu1 %v2458_v54 }
 0x788   : > { %5000 = vmatmul.mubr.msk.f32.vlgmr.msra.gmra.mxu1 %vm1109_vm2, %v5544_v28  ;;  %5002 = vmatprep.subr.mxu0 %v2543_v55 }
 0x789   : > { %5003 = vmatpush3.msra.mxu0 %v2543_v55  ;;  %v2541_v56 = vpop.permute.xlu1 %2540  ;;  %5013 = vmatprep.mubr.msk.f32.mxu1 %vm1109_vm2, %v2625_v57 }
 0x78a   : > { %5004 = vmatprep.subr.mxu0 %v2541_v56 }
 0x78b   : > { %5005 = vmatpush3.msra.mxu0 %v2541_v56 }
 0x78c   : > { %5007 = vmatmul.mubr.msk.f32.vlgmr.msra.gmra.mxu0 %vm1109_vm2, %v5549_v31 }
 0x78d   : > { %5020 = vmatprep.mubr.msk.f32.mxu0 %vm1109_vm2, %v2625_v57 }
 0x7d5   : > { %v4994_v58 = vpop.f32.mrf.mxu1 }
 0x7d6   : > { %v2454_v61 = vadd.f32 %v4994_v58, %v4627_v59 }
 0x7d7   : > { %v2438_v60 = vpop.f32.mrf.mxu1 }
 0x7d8   : > { %v2453_v0 = vadd.f32 %v4627_v59, %v2438_v60 }
 0x848   : > { %v5001_v62 = vpop.f32.mrf.mxu1 }
 0x849   : > { %v2539_v1 = vadd.f32 %v5001_v62, %v2454_v61  ;;  %v5273_v61 = vmov 0.0  }
 0x84a   : > { %v2529_v63 = vpop.f32.mrf.mxu1 }
 0x84b   : > { %v2538_v3 = vadd.f32 %v2529_v63, %v2453_v0  ;;  %v3240_v63 = vld [vmem:[%s5792_s0] sm:$0xff] }
 0x84c   : > { %v5008_v2 = vpop.f32.mrf.mxu0 }
 0x84d   : > { %v2622_v4 = vadd.f32 %v5008_v2, %v2539_v1  ;;  %v4661_v2 = vld [vmem:[%s5792_s0 + $0x8] sm:$0xff] }
 0x84e   : > { %v2612_v5 = vpop.f32.mrf.mxu0 }
 0x84f   : > { %v2624_v6 = vmax.f32 %v2622_v4, 0.0  ;;  %v2621_v7 = vadd.f32 %v2612_v5, %v2538_v3  ;;  %v4663_v5 = vld [vmem:[%s5792_s0 + $0x10] sm:$0xff]  ;;  %s5799_s0 = sld [smem:[#allocation10_spill]] }
 0x851   : > { %v2623_v8 = vmax.f32 %v2621_v7, 0.0  ;;  %5009 = vmatprep.subr.mxu1 %v2624_v6  ;;  %v3488_v7 = vld [vmem:[%s5428_s13] sm:$0xff] }
 0x852   : > { %5010 = vmatpush3.msra.mxu1 %v2624_v6 }
 0x853   : > { %5011 = vmatprep.subr.mxu1 %v2623_v8 }
 0x854   : > { %5012 = vmatpush3.msra.mxu1 %v2623_v8 }
 0x855   : > { %5014 = vmatmul.mubr.msk.f32.vlgmr.msra.gmra.mxu1 %vm1109_vm2, %v2626_v9  ;;  %5023 = vmatprep.subr.mxu1 %v4641_v16 }
 0x856   : > { %5024 = vmatpush3.msra.mxu1 %v4641_v16 }
 0x857   : > { %5025 = vmatprep.subr.mxu1 %v4640_v17 }
 0x858   : > { %5026 = vmatpush3.msra.mxu1 %v4640_v17 }
 0x859   : > { %5027 = vmatprep.subr.mxu1 %v4639_v22 }
 0x85a   : > { %5028 = vmatpush3.msra.mxu1 %v4639_v22 }
 0x85b   : > { %5029 = vmatprep.subr.mxu1 %v4638_v23 }
 0x85c   : > { %5030 = vmatpush3.msra.mxu1 %v4638_v23  ;;  %v5660_v23 = vld [vmem:[%s5793_s18] sm:$0xff]  ;;  %s5798_s18 = sld [smem:[#allocation11_spill]] }
 0x915   : > { %v5015_v10 = vpop.f32.mrf.mxu1 }
 0x916   : > { %v2711_v11 = vsub.f32 %v2624_v6, %v5015_v10  ;;  %v4660_v10 = vld [vmem:[%s5789_s7 + $0x1] ss:$0 sm:$0xff] }
 0x917   : > { %v2701_v12 = vpop.f32.mrf.mxu1 }
 0x918   : > { %v2713_v13 = vmul.f32 %v2711_v11, %v2711_v11  ;;  %v2710_v14 = vsub.f32 %v2623_v8, %v2701_v12 }
 0x91a   : > { %v2712_v15 = vmul.f32 %v2710_v14, %v2710_v14  ;;  %5016 = vmatprep.subr.mxu0 %v2713_v13 }
 0x91b   : > { %5017 = vmatpush3.msra.mxu0 %v2713_v13 }
 0x91c   : > { %5018 = vmatprep.subr.mxu0 %v2712_v15 }
 0x91d   : > { %5019 = vmatpush3.msra.mxu0 %v2712_v15 }
 0x91e   : > { %5021 = vmatmul.mubr.msk.f32.vlgmr.msra.gmra.mxu0 %vm1109_vm2, %v2626_v9 }
 0x91f   : > { %5038 = vmatprep.mubr.msk.f32.mxu0 %vm1109_vm2, %v5520_v20 }
 0x9de   : > { %v5022_v26 = vpop.f32.mrf.mxu0 }
 0x9df   : > { %v2786_v27 = vadd.f32 1e-05, %v5022_v26 }
 0x9e0   : > { %v2780_v29 = vpop.f32.mrf.mxu0 }
 0x9e1   : > { %5222 = vrsqrt.f32 %v2786_v27  ;;  %v2781_v30 = vadd.f32 1e-05, %v2780_v29 }
 0x9e3   : > { %5224 = vrsqrt.f32 %v2781_v30 }
 0x9ee   : > { %v5223_v20 = vpop.eup %5222 }
 0x9ef   : > { %v2792_v33 = vmul.f32 %v5223_v20, %v2711_v11 }
 0x9f0   : > { %v5225_v34 = vpop.eup %5224 }
 0x9f1   : > { %v2791_v36 = vmul.f32 %v5225_v34, %v2710_v14  ;;  %v2800_v37 = vmul.f32 %v4636_v32, %v2792_v33  ;;  %v3733_v33 = vld [vmem:[%s5794_s22 + $0x18] sm:$0xff]  ;;  %v3732_v34 = vld [vmem:[%s5794_s22 + $0x10] sm:$0xff] }
 0x9f3   : > { %v2799_v38 = vmul.f32 %v4636_v32, %v2791_v36  ;;  %v2808_v39 = vadd.f32 %v4637_v35, %v2800_v37  ;;  %v3730_v36 = vld [vmem:[%s5794_s22] sm:$0xff] }
 0x9f5   : > { %v2807_v40 = vadd.f32 %v4637_v35, %v2799_v38  ;;  %v5595_v42 = vadd.f32 %v2808_v39, %v5513_v19  ;;  %v3731_v35 = vld [vmem:[%s5794_s22 + $0x8] sm:$0xff] }
 0x9f7   : > { %v5592_v41 = vadd.f32 %v2807_v40, %v5511_v18 }
 0x9f9   : > { %5031 = vmatprep.mubr.msk.f32.mxu1 %vm1299_vm3, %v5592_v41 }
 0x9fa   : > { %5032 = vmatmul.mubr.msk.f32.vlgmr.msra.gmra.mxu1 %vm1299_vm3, %v5595_v42 }
 0x9fb   : > { %5052 = vmatprep.mubr.msk.f32.mxu1 %vm1109_vm2, %v5535_v25 }
 0xaba   : > { %v5033_v43 = vpop.f32.mrf.mxu1 }
 0xabb   : > { %2986 = vrot.lane.b32.xlu0 %v5033_v43, %s5270_s23  ;;  %5034 = vmatprep.subr.mxu0 %v5033_v43 }
 0xabc   : > { %v2890_v44 = vpop.f32.mrf.mxu1  ;;  %5035 = vmatpush3.msra.mxu0 %v5033_v43 }
 0xabd   : > { %2984 = vrot.lane.b32.xlu1 %v2890_v44, %s5270_s23  ;;  %5036 = vmatprep.subr.mxu0 %v2890_v44 }
 0xabe   : > { %5037 = vmatpush3.msra.mxu0 %v2890_v44 }
 0xabf   : > { %3069 = vrot.lane.b32.xlu0 %v5033_v43, %s5271_s26  ;;  %5039 = vmatmul.mubr.msk.f32.vlgmr.msra.gmra.mxu0 %vm1109_vm2, %v5531_v24 }
 0xac0   : > { %5045 = vmatprep.mubr.msk.f32.mxu0 %vm1109_vm2, %v5525_v21  ;;  %v4655_v21 = vld [vmem:[%s5343_s30 + $0x38] sm:$0xff] }
 0xac1   : > { %3067 = vrot.lane.b32.xlu1 %v2890_v44, %s5271_s26  ;;  %v4671_v44 = vld [vmem:[%s5791_s11 + $0x1] ss:$0 sm:$0xff] }
 0xb2d   : > { %v2987_v18 = vpop.permute.xlu0 %2986 }
 0xb2e   : > { %5041 = vmatprep.subr.mxu0 %v2987_v18 }
 0xb2f   : > { %v2985_v19 = vpop.permute.xlu1 %2984  ;;  %5042 = vmatpush3.msra.mxu0 %v2987_v18 }
 0xb30   : > { %5043 = vmatprep.subr.mxu0 %v2985_v19 }
 0xb31   : > { %v3070_v25 = vpop.permute.xlu0 %3069  ;;  %5044 = vmatpush3.msra.mxu0 %v2985_v19 }
 0xb32   : > { %5046 = vmatmul.mubr.msk.f32.vlgmr.msra.gmra.mxu0 %vm1109_vm2, %v5544_v28  ;;  %5048 = vmatprep.subr.mxu1 %v3070_v25  ;;  %v4652_v28 = vld [vmem:[%s5343_s30 + $0x20] sm:$0xff] }
 0xb33   : > { %5049 = vmatpush3.msra.mxu1 %v3070_v25  ;;  %v3068_v24 = vpop.permute.xlu1 %3067  ;;  %5055 = vmatprep.subr.mxu0 %v4655_v21 }
 0xb34   : > { %5050 = vmatprep.subr.mxu1 %v3068_v24  ;;  %5056 = vmatpush3.msra.mxu0 %v4655_v21 }
 0xb35   : > { %5051 = vmatpush3.msra.mxu1 %v3068_v24  ;;  %5057 = vmatprep.subr.mxu0 %v4654_v45 }
 0xb36   : > { %5053 = vmatmul.mubr.msk.f32.vlgmr.msra.gmra.mxu1 %vm1109_vm2, %v5549_v31  ;;  %5058 = vmatpush3.msra.mxu0 %v4654_v45 }
 0xb37   : > { %5059 = vmatprep.subr.mxu0 %v4653_v46  ;;  %5066 = vmatprep.subr.mxu1 %v5273_v61 }
 0xb38   : > { %5060 = vmatpush3.msra.mxu0 %v4653_v46  ;;  %5070 = vmatprep.mubr.msk.f32.mxu1 %vm5274_vm4, %v5273_v61 }
 0xb39   : > { %5061 = vmatprep.subr.mxu0 %v4652_v28 }
 0xb3a   : > { %5062 = vmatpush3.msra.mxu0 %v4652_v28 }
 0xb3b   : > { %5080 = vmatprep.subr.mxu0 %v5273_v61 }
 0xb7f   : > { %v5040_v47 = vpop.f32.mrf.mxu0 }
 0xb80   : > { %v2981_v50 = vadd.f32 %v5040_v47, %v4647_v49 }
 0xb81   : > { %v2965_v48 = vpop.f32.mrf.mxu0 }
 0xb82   : > { %v2980_v53 = vadd.f32 %v4647_v49, %v2965_v48 }
 0xbf2   : > { %v5047_v51 = vpop.f32.mrf.mxu0 }
 0xbf3   : > { %v3066_v31 = vadd.f32 %v5047_v51, %v2981_v50  ;;  %v4674_v50 = vld [vmem:[%s5797_s28] ss:$0 sm:$0xff] }
 0xbf4   : > { %v3056_v52 = vpop.f32.mrf.mxu0 }
 0xbf5   : > { %v3065_v55 = vadd.f32 %v3056_v52, %v2980_v53 }
 0xbf6   : > { %v5054_v54 = vpop.f32.mrf.mxu1 }
 0xbf7   : > { %v3149_v56 = vadd.f32 %v5054_v54, %v3066_v31 }
 0xbf8   : > { %v3139_v57 = vpop.f32.mrf.mxu1 }
 0xbf9   : > { %v3148_v58 = vadd.f32 %v3139_v57, %v3065_v55  ;;  %v3151_v60 = vmax.f32 %v3149_v56, 0.0 }
 0xbfb   : > { %v3150_v59 = vmax.f32 %v3148_v58, 0.0  ;;  %v4683_v58 = vld [vmem:[%s5794_s22 + $0x38] sm:$0xff] }
 0xbfd   : > { %5063 = vmatprep.mubr.msk.f32.mxu0 %vm1299_vm3, %v3150_v59  ;;  %v4682_v59 = vld [vmem:[%s5794_s22 + $0x30] sm:$0xff] }
 0xbfe   : > { %5064 = vmatmul.mubr.msk.f32.vlgmr.msra.gmra.mxu0 %vm1299_vm3, %v3151_v60  ;;  %v4681_v60 = vld [vmem:[%s5794_s22 + $0x28] sm:$0xff] }
 0xbff   : > { %5084 = vmatprep.mubr.msk.f32.mxu0 %vm5274_vm4, %v5273_v61 }
 0xcbe   : > { %v5065_v62 = vpop.f32.mrf.mxu0 }
 0xcbf   : > { %3327 = vrot.lane.b32.xlu0 %v5065_v62, %s5270_s23  ;;  %5067 = vmatpush3.msra.mxu1 %v5065_v62 }
 0xcc0   : > { %v3231_v0 = vpop.f32.mrf.mxu0  ;;  %5068 = vmatprep.subr.mxu1 %v5273_v61 }
 0xcc1   : > { %3325 = vrot.lane.b32.xlu1 %v3231_v0, %s5270_s23  ;;  %5069 = vmatpush3.msra.mxu1 %v3231_v0  ;;  %s5795_s23 = sld [smem:[#allocation13_spill]] }
 0xcc2   : > { %5071 = vmatmul.mubr.msk.f32.vlgmr.msra.gmra.mxu1 %vm1109_vm2, %v3240_v63  ;;  %5073 = vmatprep.subr.mxu1 %v5273_v61 }
 0xcc3   : > { %3409 = vrot.lane.b32.xlu0 %v5065_v62, %s5271_s26  ;;  %5077 = vmatprep.mubr.msk.f32.mxu1 %vm5274_vm4, %v5273_v61  ;;  %v4680_v62 = vld [vmem:[%s5794_s22 + $0x20] sm:$0xff] }
 0xcc5   : > { %3407 = vrot.lane.b32.xlu1 %v3231_v0, %s5271_s26  ;;  %s5796_s26 = sld [smem:[#allocation8_spill]] }
 0xcc7   : > { %v3818_v37 = vld [vmem:[%s5795_s23 + $0x18] sm:$0xff]  ;;  %v3817_v24 = vld [vmem:[%s5795_s23 + $0x10] sm:$0xff]  ;;  %v3816_v21 = vld [vmem:[%s5795_s23 + $0x8] sm:$0xff] }
 0xcc8   : > { %v3815_v45 = vld [vmem:[%s5795_s23] sm:$0xff]  ;;  %v4690_v63 = vld [vmem:[%s5795_s23 + $0x38] sm:$0xff] }
 0xccb   : > { %v4672_v46 = vld [vmem:[%s5796_s26] ss:$0 sm:$0xff] }
 0xd31   : > { %v3328_v1 = vpop.permute.xlu0 %3327 }
 0xd32   : > { %5074 = vmatpush3.msra.mxu1 %v3328_v1 }
 0xd33   : > { %v3326_v3 = vpop.permute.xlu1 %3325  ;;  %5075 = vmatprep.subr.mxu1 %v5273_v61 }
 0xd34   : > { %5076 = vmatpush3.msra.mxu1 %v3326_v3 }
 0xd35   : > { %v3410_v4 = vpop.permute.xlu0 %3409  ;;  %5078 = vmatmul.mubr.msk.f32.vlgmr.msra.gmra.mxu1 %vm1109_vm2, %v4661_v2  ;;  %5087 = vmatprep.subr.mxu1 %v5273_v61 }
 0xd36   : > { %5081 = vmatpush3.msra.mxu0 %v3410_v4  ;;  %5088 = vmatpush3.msra.mxu1 %v5595_v42  ;;  %v4670_v42 = vld [vmem:[%s5790_s10 + $0x1] ss:$0 sm:$0xff]  ;;  %v4678_v4 = vld [vmem:[%s5798_s18] ss:$0 sm:$0xff] }
 0xd37   : > { %5082 = vmatprep.subr.mxu0 %v5273_v61  ;;  %v3408_v6 = vpop.permute.xlu1 %3407  ;;  %5089 = vmatprep.subr.mxu1 %v5273_v61 }
 0xd38   : > { %5083 = vmatpush3.msra.mxu0 %v3408_v6  ;;  %5090 = vmatpush3.msra.mxu1 %v5592_v41  ;;  %v4679_v6 = vld [vmem:[%s5799_s0] ss:$0 sm:$0xff] }
 0xd39   : > { %5085 = vmatmul.mubr.msk.f32.vlgmr.msra.gmra.mxu0 %vm1109_vm2, %v4663_v5  ;;  %5094 = vmatprep.subr.mxu0 %v5273_v61 }
 0xd3a   : > { %5096 = vmatprep.mubr.msk.f32.mxu0 %vm5274_vm4, %v5273_v61  ;;  %5091 = vmatprep.mubr.msk.f32.mxu1 %vm5274_vm4, %v5273_v61 }
 0xd3b   : > { %5099 = vmatprep.subr.mxu1 %v5273_v61  ;;  %5092 = vmatmul.mubr.msk.f32.vlgmr.msra.gmra.mxu1 %vm1109_vm2, %v3488_v7 }
 0xd3c   : > { %5101 = vmatprep.mubr.msk.f32.mxu1 %vm5274_vm4, %v5273_v61 }
 0xd82   : > { %v3310_v8 = vpop.f32.mrf.mxu1 }
 0xd83   : > { %v3320_v11 = vadd.f32 %v4660_v10, %v3310_v8  ;;  %v4689_v10 = vld [vmem:[%s5795_s23 + $0x30] sm:$0xff] }
 0xd84   : > { %v5072_v9 = vpop.f32.mrf.mxu1 }
 0xdf5   : > { %v3400_v12 = vpop.f32.mrf.mxu1 }
 0xdf6   : > { %v3404_v14 = vadd.f32 %v3400_v12, %v3320_v11  ;;  %v4688_v11 = vld [vmem:[%s5795_s23 + $0x28] sm:$0xff]  ;;  %v4687_v12 = vld [vmem:[%s5795_s23 + $0x20] sm:$0xff] }
 0xdf7   : > { %v5079_v13 = vpop.f32.mrf.mxu1 }
 0xdf8   : > { %v4685_v13 = vld [vmem:[%s5796_s26 + $0x1] ss:$0 sm:$0xff] }
 0xdf9   : > { %v3482_v15 = vpop.f32.mrf.mxu0 }
 0xdfa   : > { %v3486_v16 = vadd.f32 %v3482_v15, %v3404_v14 }
 0xdfb   : > { %v5086_v17 = vpop.f32.mrf.mxu0  ;;  %v3558_v26 = vpop.f32.mrf.mxu1 }
 0xdfc   : > { %v3487_v22 = vmax.f32 %v3486_v16, 0.0 }
 0xdfd   : > { %v5093_v27 = vpop.f32.mrf.mxu1 }
 0xdfe   : > { %5095 = vmatpush3.msra.mxu0 %v3487_v22 }
 0xdff   : > { %5097 = vmatmul.mubr.msk.f32.vlgmr.msra.gmra.mxu0 %vm3567_vm5, %v5660_v23  ;;  %5104 = vmatprep.subr.mxu0 %v5273_v61 }
 0xe00   : > { %5112 = vmatprep.mubr.msk.f32.mxu0 %vm5274_vm4, %v5273_v61  ;;  %5105 = vmatpush3.msra.mxu0 %v3733_v33 }
 0xe01   : > { %5106 = vmatprep.subr.mxu0 %v5273_v61 }
 0xe02   : > { %5107 = vmatpush3.msra.mxu0 %v3732_v34 }
 0xe03   : > { %5108 = vmatprep.subr.mxu0 %v5273_v61 }
 0xe04   : > { %5109 = vmatpush3.msra.mxu0 %v3731_v35  ;;  %v4401_v35 = vld [vmem:[%s5423_s8 + $0x18] sm:$0xff] }
 0xe05   : > { %5110 = vmatprep.subr.mxu0 %v5273_v61 }
 0xe06   : > { %5111 = vmatpush3.msra.mxu0 %v3730_v36  ;;  %v4400_v36 = vld [vmem:[%s5423_s8 + $0x10] sm:$0xff] }
 0xe07   : > { %5126 = vmatprep.subr.mxu0 %v5273_v61 }
 0xebf   : > { %v3637_v29 = vpop.f32.mrf.mxu0 }
 0xec0   : > { %v3641_v30 = vsub.f32 %v3487_v22, %v3637_v29  ;;  %v4692_v22 = vld [vmem:[%s5797_s28 + $0x1] ss:$0 sm:$0xff] }
 0xec1   : > { %v5098_v20 = vpop.f32.mrf.mxu0 }
 0xec2   : > { %v3642_v32 = vmul.f32 %v3641_v30, %v3641_v30 }
 0xec4   : > { %5100 = vmatpush3.msra.mxu1 %v3642_v32 }
 0xec5   : > { %5102 = vmatmul.mubr.msk.f32.vlgmr.msra.gmra.mxu1 %vm3567_vm5, %v5660_v23  ;;  %5115 = vmatprep.subr.mxu1 %v5273_v61 }
 0xec6   : > { %5123 = vmatprep.mubr.msk.f32.mxu1 %vm5274_vm4, %v5273_v61  ;;  %5116 = vmatpush3.msra.mxu1 %v3818_v37  ;;  %v4399_v37 = vld [vmem:[%s5423_s8 + $0x8] sm:$0xff] }
 0xec7   : > { %5117 = vmatprep.subr.mxu1 %v5273_v61 }
 0xec8   : > { %5118 = vmatpush3.msra.mxu1 %v3817_v24 }
 0xec9   : > { %5119 = vmatprep.subr.mxu1 %v5273_v61 }
 0xeca   : > { %5120 = vmatpush3.msra.mxu1 %v3816_v21 }
 0xecb   : > { %5121 = vmatprep.subr.mxu1 %v5273_v61 }
 0xecc   : > { %5122 = vmatpush3.msra.mxu1 %v3815_v45 }
 0xecd   : > { %5131 = vmatprep.subr.mxu1 %v5273_v61 }
 0xf85   : > { %v3709_v38 = vpop.f32.mrf.mxu1 }
 0xf86   : > { %v3710_v39 = vadd.f32 1e-05, %v3709_v38  ;;  %v4398_v38 = vld [vmem:[%s5423_s8] sm:$0xff] }
 0xf87   : > { %v5103_v40 = vpop.f32.mrf.mxu1 }
 0xf88   : > { %5226 = vrsqrt.f32 %v3710_v39 }
 0xf95   : > { %v5227_v41 = vpop.eup %5226 }
 0xf96   : > { %v3714_v43 = vmul.f32 %v5227_v41, %v3641_v30 }
 0xf98   : > { %v3721_v18 = vmul.f32 %v4670_v42, %v3714_v43  ;;  %v4698_v42 = vld [vmem:[%s5798_s18 + $0x1] ss:$0 sm:$0xff] }
 0xf9a   : > { %v3728_v19 = vadd.f32 %v4671_v44, %v3721_v18  ;;  %v4699_v44 = vld [vmem:[%s5799_s0 + $0x1] ss:$0 sm:$0xff] }
 0xf9c   : > { %v3729_v25 = vadd.f32 %v3728_v19, %v3558_v26 }
 0xf9e   : > { %5113 = vmatmul.mubr.msk.f32.vlgmr.msra.gmra.mxu0 %vm1299_vm3, %v3729_v25 }
 0xf9f   : > { %5128 = vmatprep.mubr.msk.f32.mxu0 %vm5274_vm4, %v5273_v61 }
0x105e   : > { %v3810_v28 = vpop.f32.mrf.mxu0 }
0x105f   : > { %v3811_v47 = vadd.f32 %v4672_v46, %v3810_v28 }
0x1060   : > { %v5114_v48 = vpop.f32.mrf.mxu0 }
0x1061   : > { %v3814_v49 = vmax.f32 %v3811_v47, 0.0 }
0x1063   : > { %5124 = vmatmul.mubr.msk.f32.vlgmr.msra.gmra.mxu1 %vm1299_vm3, %v3814_v49 }
0x1064   : > { %5133 = vmatprep.mubr.msk.f32.mxu1 %vm5274_vm4, %v5273_v61 }
0x1123   : > { %v3895_v51 = vpop.f32.mrf.mxu1 }
0x1124   : > { %v3896_v52 = vadd.f32 %v4674_v50, %v3895_v51 }
0x1125   : > { %v5125_v53 = vpop.f32.mrf.mxu1 }
0x1126   : > { %v3899_v31 = vmax.f32 %v3896_v52, 0.0 }
0x1128   : > { %5127 = vmatpush3.msra.mxu0 %v3899_v31 }
0x1129   : > { %5129 = vmatmul.mubr.msk.f32.vlgmr.msra.gmra.mxu0 %vm3567_vm5, %v5660_v23  ;;  %5136 = vmatprep.subr.mxu0 %v5273_v61 }
0x112a   : > { %5144 = vmatprep.mubr.msk.f32.mxu0 %vm5274_vm4, %v5273_v61  ;;  %5137 = vmatpush3.msra.mxu0 %v4683_v58 }
0x112b   : > { %5138 = vmatprep.subr.mxu0 %v5273_v61 }
0x112c   : > { %5139 = vmatpush3.msra.mxu0 %v4682_v59 }
0x112d   : > { %5140 = vmatprep.subr.mxu0 %v5273_v61 }
0x112e   : > { %5141 = vmatpush3.msra.mxu0 %v4681_v60 }
0x112f   : > { %5142 = vmatprep.subr.mxu0 %v5273_v61 }
0x1130   : > { %5143 = vmatpush3.msra.mxu0 %v4680_v62 }
0x1131   : > { %5158 = vmatprep.subr.mxu0 %v5273_v61 }
0x11e9   : > { %v3968_v54 = vpop.f32.mrf.mxu0 }
0x11ea   : > { %v3972_v55 = vsub.f32 %v3899_v31, %v3968_v54 }
0x11eb   : > { %v5130_v56 = vpop.f32.mrf.mxu0 }
0x11ec   : > { %v3973_v57 = vmul.f32 %v3972_v55, %v3972_v55 }
0x11ee   : > { %5132 = vmatpush3.msra.mxu1 %v3973_v57 }
0x11ef   : > { %5134 = vmatmul.mubr.msk.f32.vlgmr.msra.gmra.mxu1 %vm3567_vm5, %v5660_v23  ;;  %5147 = vmatprep.subr.mxu1 %v5273_v61 }
0x11f0   : > { %5155 = vmatprep.mubr.msk.f32.mxu1 %vm5274_vm4, %v5273_v61  ;;  %5148 = vmatpush3.msra.mxu1 %v4690_v63 }
0x11f1   : > { %5149 = vmatprep.subr.mxu1 %v5273_v61 }
0x11f2   : > { %5150 = vmatpush3.msra.mxu1 %v4689_v10 }
0x11f3   : > { %5151 = vmatprep.subr.mxu1 %v5273_v61 }
0x11f4   : > { %5152 = vmatpush3.msra.mxu1 %v4688_v11 }
0x11f5   : > { %5153 = vmatprep.subr.mxu1 %v5273_v61 }
0x11f6   : > { %5154 = vmatpush3.msra.mxu1 %v4687_v12 }
0x11f7   : > { %5163 = vmatprep.subr.mxu1 %v5273_v61 }
0x12af   : > { %v4040_v0 = vpop.f32.mrf.mxu1 }
0x12b0   : > { %v4041_v1 = vadd.f32 1e-05, %v4040_v0 }
0x12b1   : > { %v5135_v2 = vpop.f32.mrf.mxu1 }
0x12b2   : > { %5228 = vrsqrt.f32 %v4041_v1 }
0x12bf   : > { %v5229_v3 = vpop.eup %5228 }
0x12c0   : > { %v4045_v5 = vmul.f32 %v5229_v3, %v3972_v55 }
0x12c2   : > { %v4052_v7 = vmul.f32 %v4678_v4, %v4045_v5 }
0x12c4   : > { %v4059_v8 = vadd.f32 %v4679_v6, %v4052_v7 }
0x12c6   : > { %v4060_v9 = vadd.f32 %v4059_v8, %v3729_v25 }
0x12c8   : > { %5145 = vmatmul.mubr.msk.f32.vlgmr.msra.gmra.mxu0 %vm1299_vm3, %v4060_v9 }
0x12c9   : > { %5160 = vmatprep.mubr.msk.f32.mxu0 %vm5274_vm4, %v5273_v61 }
0x1388   : > { %v4143_v14 = vpop.f32.mrf.mxu0 }
0x1389   : > { %v4144_v15 = vadd.f32 %v4685_v13, %v4143_v14 }
0x138a   : > { %v5146_v16 = vpop.f32.mrf.mxu0 }
0x138b   : > { %v4147_v17 = vmax.f32 %v4144_v15, 0.0 }
0x138d   : > { %5156 = vmatmul.mubr.msk.f32.vlgmr.msra.gmra.mxu1 %vm1299_vm3, %v4147_v17 }
0x138e   : > { %5165 = vmatprep.mubr.msk.f32.mxu1 %vm5274_vm4, %v5273_v61 }
0x144d   : > { %v4230_v26 = vpop.f32.mrf.mxu1 }
0x144e   : > { %v4231_v27 = vadd.f32 %v4692_v22, %v4230_v26 }
0x144f   : > { %v5157_v29 = vpop.f32.mrf.mxu1 }
0x1450   : > { %v4234_v30 = vmax.f32 %v4231_v27, 0.0 }
0x1452   : > { %5159 = vmatpush3.msra.mxu0 %v4234_v30 }
0x1453   : > { %5161 = vmatmul.mubr.msk.f32.vlgmr.msra.gmra.mxu0 %vm3567_vm5, %v5660_v23  ;;  %5168 = vmatprep.subr.mxu0 %v5273_v61 }
0x1454   : > { %5176 = vmatprep.mubr.msk.f32.mxu0 %vm5274_vm4, %v5273_v61  ;;  %5169 = vmatpush3.msra.mxu0 %v4401_v35 }
0x1455   : > { %5170 = vmatprep.subr.mxu0 %v5273_v61 }
0x1456   : > { %5171 = vmatpush3.msra.mxu0 %v4400_v36 }
0x1457   : > { %5172 = vmatprep.subr.mxu0 %v5273_v61 }
0x1458   : > { %5173 = vmatpush3.msra.mxu0 %v4399_v37 }
0x1459   : > { %5174 = vmatprep.subr.mxu0 %v5273_v61  ;;  %v4700_v61 = vld [vmem:[%s5418_s19] ss:$0 sm:$0xff] }
0x145a   : > { %5175 = vmatpush3.msra.mxu0 %v4398_v38 }
0x1513   : > { %v4305_v20 = vpop.f32.mrf.mxu0 }
0x1514   : > { %v4309_v32 = vsub.f32 %v4234_v30, %v4305_v20 }
0x1515   : > { %v5162_v33 = vpop.f32.mrf.mxu0 }
0x1516   : > { %v4310_v34 = vmul.f32 %v4309_v32, %v4309_v32 }
0x1518   : > { %5164 = vmatpush3.msra.mxu1 %v4310_v34 }
0x1519   : > { %5166 = vmatmul.mubr.msk.f32.vlgmr.msra.gmra.mxu1 %vm3567_vm5, %v5660_v23 }
0x15d9   : > { %v4377_v23 = vpop.f32.mrf.mxu1 }
0x15da   : > { %v4378_v39 = vadd.f32 1e-05, %v4377_v23 }
0x15db   : > { %v5167_v40 = vpop.f32.mrf.mxu1 }
0x15dc   : > { %5230 = vrsqrt.f32 %v4378_v39 }
0x15e9   : > { %v5231_v41 = vpop.eup %5230 }
0x15ea   : > { %v4382_v43 = vmul.f32 %v5231_v41, %v4309_v32 }
0x15ec   : > { %v4389_v18 = vmul.f32 %v4698_v42, %v4382_v43 }
0x15ee   : > { %v4396_v19 = vadd.f32 %v4699_v44, %v4389_v18 }
0x15f0   : > { %v4397_v25 = vadd.f32 %v4396_v19, %v4060_v9 }
0x15f2   : > { %5177 = vmatmul.mubr.msk.f32.vlgmr.msra.gmra.mxu0 %vm1299_vm3, %v4397_v25 }
0x16b2   : > { %v4478_v24 = vpop.f32.mrf.mxu0 }
0x16b3   : > { %v4479_v21 = vadd.f32 %v4700_v61, %v4478_v24 }
0x16b4   : > { %v5178_v45 = vpop.f32.mrf.mxu0 }
0x16b5   : > { %4482 = vst [vmem:[%s930_s2] sm:$0xff] %v4479_v21 }
0x16b6 PF: > { %s71_s15 = sadd.s32 1, %s5238_s15  }
0x16b7   : > { %p68_p5 = scmp.ge.s32.totalorder %s71_s15, 4  }
0x16b9   :  { %70 = sbr.rel (!%p68_p5) target bundleno = 46 (0x2e), region = 220 }

</bundles_post_ra>
